<compile_context>
chip_gen: v7x
topology: tpu7x:2x2x1
jax: 0.10.0
libtpu: 0.0.40
codegen_flags: <defaults>
</compile_context>

<pallas_src>
import jax
import jax.numpy as jnp
import numpy as np
from jax.experimental import pallas as pl
from jax.experimental.pallas import tpu as pltpu


# ------------------------- helpers (kernel + reference) ----------------------

def _relu6(v):
    return jnp.clip(v, 0.0, 6.0)


def _softplus(v):
    # matches torch.nn.Softplus(beta=1, threshold=20)
    return jnp.where(v > 20.0, v, jnp.log1p(jnp.exp(jnp.minimum(v, 20.0))))


def _pad_to(a, shape):
    pads = [(0, t - s) for s, t in zip(a.shape, shape)]
    return jnp.pad(a, pads)


def _default_compute_dtype():
    """bf16 on v6e / v7x (bf16 MXU + VPU + EUP), f32 on v5e and anything else."""
    try:
        kind = jax.devices()[0].device_kind.lower()
    except Exception:
        return jnp.float32
    if ("v6" in kind) or ("v7" in kind) or ("tpu7" in kind) or ("7x" in kind):
        return jnp.bfloat16
    return jnp.float32


# --------------------------------- kernel -----------------------------------

def nsc_kernel(xt_ref, h_ref,
               pw1_ref, pb1_ref, pw2_ref, pb2_ref,
               pw3_ref, pb3_ref, pw4_ref, pb4_ref,
               base_ref, w1tau_ref, w2blk_ref, b2_ref, out0_ref,
               alphas_ref, cum_ref):
    f32 = jnp.float32
    cdt = xt_ref.dtype                       # compute dtype (f32 or bf16)

    xt = xt_ref[...]                         # (D, TN)   batch on lanes
    h = h_ref[...]                           # (1, TN)   horizon row

    # ---- profile MLP, batch-on-lane orientation (ReLU6 after every layer) ----
    a = _relu6(jnp.dot(pw1_ref[...], xt, preferred_element_type=f32) + pb1_ref[...])
    a = _relu6(jnp.dot(pw2_ref[...], a.astype(cdt), preferred_element_type=f32) + pb2_ref[...])
    a = _relu6(jnp.dot(pw3_ref[...], a.astype(cdt), preferred_element_type=f32) + pb3_ref[...])
    a = _relu6(jnp.dot(pw4_ref[...], a.astype(cdt), preferred_element_type=f32) + pb4_ref[...])
    alphas_ref[...] = a                      # (K, TN)   lane-dense, unmasked store

    # ---- fused K-cluster outcome nets (only tau-dependent math per tile) ----
    # base/w1tau stacked along sublanes -> one tanh over (K*HS, TN),
    # one block-diagonal (K, K*HS) @ (K*HS, TN) matmul, one full-block store.
    hid = jnp.tanh(base_ref[...] + w1tau_ref[...] * h)              # (K*HS, TN)
    pre = jnp.dot(w2blk_ref[...], hid.astype(cdt),
                  preferred_element_type=f32)                       # (K, TN) f32
    cum_ref[...] = _softplus(pre + b2_ref[...]) - out0_ref[...]     # f32 epilogue


# ------------------------- one-time parameter prepare ------------------------

def nsc_prepare(params, compute_dtype=None):
    """Batch-independent precompute, hoisted out of the per-call path.

    Pads / transposes the profile weights to batch-on-lane orientation, folds the
    latent part of every cluster outcome net, stacks the K clusters along
    sublanes, and evaluates the tau=0 branch.  Call once per parameter set.
    """
    if compute_dtype is None:
        compute_dtype = _default_compute_dtype()
    cdt = compute_dtype
    f32 = jnp.float32

    D = params["pw1"].shape[0]
    K, R = params["latent"].shape
    H = params["ob1"].shape[1]
    risks = params["ob2"].shape[1]
    assert risks == 1, "kernel implements the risks == 1 branch (betas == 1)"
    # TODO(synk): risks > 1 (competing-network softmax betas) and gradient=True
    # (intensity via autograd w.r.t. tau) are not implemented in the kernel.

    HP = 128 * pl.cdiv(H, 128)   # profile hidden width -> lane multiple (matmul axis)
    HS = 8 * pl.cdiv(H, 8)       # outcome hidden width -> sublane multiple only (104)

    # ---- profile MLP weights, transposed so activations are (HP, TN) ----
    pw1_t = _pad_to(params["pw1"].astype(f32), (D, HP)).T            # (HP, D)
    pb1_t = _pad_to(params["pb1"].astype(f32), (1, HP)).T            # (HP, 1)
    pw2_t = _pad_to(params["pw2"].astype(f32), (HP, HP)).T
    pb2_t = _pad_to(params["pb2"].astype(f32), (1, HP)).T
    pw3_t = _pad_to(params["pw3"].astype(f32), (HP, HP)).T
    pb3_t = _pad_to(params["pb3"].astype(f32), (1, HP)).T
    pw4_t = _pad_to(params["pw4"].astype(f32), (HP, K)).T            # (K, HP)
    pb4_t = params["pb4"].astype(f32).T                              # (K, 1)

    # ---- per-cluster outcome nets: fold latent part, stack along sublanes ----
    w1_sq = params["ow1"].astype(f32) ** 2            # (K, R+1, H)   positive weights
    w2_sq = params["ow2"].astype(f32) ** 2            # (K, H, 1)
    base = jnp.einsum("kr,krh->kh", params["latent"].astype(f32),
                      w1_sq[:, :R, :]) + params["ob1"].astype(f32)   # (K, H)
    w1tau = w1_sq[:, R, :]                            # (K, H)  tau column of W1
    w2col = w2_sq[:, :, 0]                            # (K, H)  single-risk column of W2
    b2 = params["ob2"].astype(f32)                    # (K, 1)
    out0 = _softplus(jnp.einsum("kh,kh->k", jnp.tanh(base), w2col)
                     + b2[:, 0])[:, None]             # (K, 1)  f([latent, 0])

    base_s = _pad_to(base, (K, HS)).reshape(K * HS, 1)
    w1tau_s = _pad_to(w1tau, (K, HS)).reshape(K * HS, 1)
    w2col_p = _pad_to(w2col, (K, HS))                                # (K, HS)
    eye = jnp.eye(K, dtype=f32)
    w2blk = (eye[:, :, None] * w2col_p[None, :, :]).reshape(K, K * HS)

    return dict(
        D=D, K=K, HP=HP, HS=HS, risks=risks, compute_dtype=cdt,
        pw1=pw1_t.astype(cdt), pb1=pb1_t,
        pw2=pw2_t.astype(cdt), pb2=pb2_t,
        pw3=pw3_t.astype(cdt), pb3=pb3_t,
        pw4=pw4_t.astype(cdt), pb4=pb4_t,
        base=base_s.astype(cdt), w1tau=w1tau_s.astype(cdt),
        w2blk=w2blk.astype(cdt), b2=b2, out0=out0,
    )


# --------------------------------- wrapper ----------------------------------

def nsc_forward(x, horizon, prep, *, tile_n=None):
    N, D = x.shape
    assert D == prep["D"]
    K, HP, HS = prep["K"], prep["HP"], prep["HS"]
    cdt = prep["compute_dtype"]
    f32 = jnp.float32

    if tile_n is None:
        tile_n = 1024 if N >= 1024 else 128 * pl.cdiv(N, 128)
        # keep >= 2 grid steps when the batch allows it so both v7x TCs get work
        if N > 128:
            tile_n = min(tile_n, 128 * pl.cdiv(N, 2 * 128))
    assert tile_n % 128 == 0
    n_pad = tile_n * pl.cdiv(N, tile_n)

    xt = _pad_to(x.astype(f32), (n_pad, D)).T.astype(cdt)            # (D, n_pad)
    hrow = _pad_to(horizon.astype(f32).reshape(1, N), (1, n_pad)).astype(cdt)

    grid = (n_pad // tile_n,)

    def resident(shape):            # weights: constant index_map, stay in VMEM
        return pl.BlockSpec(shape, lambda i: (0, 0))

    in_specs = [
        pl.BlockSpec((D, tile_n), lambda i: (0, i)),     # x^T        (blocked on N)
        pl.BlockSpec((1, tile_n), lambda i: (0, i)),     # horizon row
        resident((HP, D)), resident((HP, 1)),            # pw1^T, pb1
        resident((HP, HP)), resident((HP, 1)),           # pw2^T, pb2
        resident((HP, HP)), resident((HP, 1)),           # pw3^T, pb3
        resident((K, HP)), resident((K, 1)),             # pw4^T, pb4
        resident((K * HS, 1)),                           # stacked base
        resident((K * HS, 1)),                           # stacked w1tau
        resident((K, K * HS)),                           # block-diagonal W2
        resident((K, 1)), resident((K, 1)),              # b2, out0
    ]
    out_specs = (
        pl.BlockSpec((K, tile_n), lambda i: (0, i)),     # alphas, lane-dense
        pl.BlockSpec((K, tile_n), lambda i: (0, i)),     # cum,    lane-dense
    )

    alphas_pad, cum_pad = pl.pallas_call(
        nsc_kernel,
        grid=grid,
        in_specs=in_specs,
        out_specs=out_specs,
        out_shape=(jax.ShapeDtypeStruct((K, n_pad), f32),
                   jax.ShapeDtypeStruct((K, n_pad), f32)),
        compiler_params=pltpu.CompilerParams(
            dimension_semantics=("parallel",),
            # 32 MiB is plenty even at tile_n=2048; do not raise on v7x (64 MiB phys.)
            vmem_limit_bytes=32 * 1024 * 1024),
    )(xt, hrow,
      prep["pw1"], prep["pb1"], prep["pw2"], prep["pb2"],
      prep["pw3"], prep["pb3"], prep["pw4"], prep["pb4"],
      prep["base"], prep["w1tau"], prep["w2blk"], prep["b2"], prep["out0"])

    alphas = alphas_pad[:, :N].T                         # (N, K) torch convention
    cumulative = cum_pad[:, :N].T[:, None, :]            # (N, risks=1, K)
    # gradient=False in the reference forward => intensity is None
    return cumulative, None, alphas


# ------------------------------ pure-JAX reference ---------------------------

def nsc_reference(x, horizon, p):
    h = horizon.reshape(-1, 1)
    a = _relu6(x @ p["pw1"] + p["pb1"])
    a = _relu6(a @ p["pw2"] + p["pb2"])
    a = _relu6(a @ p["pw3"] + p["pb3"])
    alphas = _relu6(a @ p["pw4"] + p["pb4"])

    K, R = p["latent"].shape
    cums = []
    for kk in range(K):
        lat = jnp.broadcast_to(p["latent"][kk:kk + 1, :], (x.shape[0], R))
        w1 = p["ow1"][kk] ** 2
        b1 = p["ob1"][kk][None, :]
        w2 = p["ow2"][kk] ** 2
        b2 = p["ob2"][kk][None, :]

        def f(tau):
            inp = jnp.concatenate([lat, tau], axis=1)
            hid = jnp.tanh(inp @ w1 + b1)
            return _softplus(hid @ w2 + b2)

        cums.append((f(h) - f(jnp.zeros_like(h)))[:, :, None])
    return jnp.concatenate(cums, axis=-1), None, alphas


# ----------------------------------- main ------------------------------------

if __name__ == "__main__":
    N, D = 8, 16                 # batch, inputdim (small test shapes)
    LAYERS = [100, 100, 100]     # profile hidden layers
    K = 3                        # clusters
    R = 50                       # representation (latent dim)
    H_SURV = 100                 # layers_surv[0]
    RISKS = 1

    key = jax.random.PRNGKey(0)
    keys = jax.random.split(key, 24)
    s = 0.15

    params = {
        # profile MLP  D -> 100 -> 100 -> 100 -> K   (weights stored (in, out))
        "pw1": jax.random.normal(keys[0], (D, LAYERS[0]), jnp.float32) * s,
        "pb1": jax.random.normal(keys[1], (1, LAYERS[0]), jnp.float32) * s,
        "pw2": jax.random.normal(keys[2], (LAYERS[0], LAYERS[1]), jnp.float32) * s,
        "pb2": jax.random.normal(keys[3], (1, LAYERS[1]), jnp.float32) * s,
        "pw3": jax.random.normal(keys[4], (LAYERS[1], LAYERS[2]), jnp.float32) * s,
        "pb3": jax.random.normal(keys[5], (1, LAYERS[2]), jnp.float32) * s,
        "pw4": jax.random.normal(keys[6], (LAYERS[2], K), jnp.float32) * s,
        "pb4": jax.random.normal(keys[7], (1, K), jnp.float32) * s,
        # per-cluster outcome nets (log-weights; squared before use)
        "latent": jax.random.normal(keys[8], (K, R), jnp.float32),
        "ow1": jax.random.normal(keys[9], (K, R + 1, H_SURV), jnp.float32) * 0.1,
        "ob1": jax.random.normal(keys[10], (K, H_SURV), jnp.float32) * 0.1,
        "ow2": jax.random.normal(keys[11], (K, H_SURV, RISKS), jnp.float32) * 0.1,
        "ob2": jax.random.normal(keys[12], (K, RISKS), jnp.float32) * 0.1,
    }

    x = jax.random.normal(keys[13], (N, D), jnp.float32)
    horizon = jax.random.uniform(keys[14], (N,), jnp.float32, minval=0.0, maxval=2.0)

    prep = nsc_prepare(params)                        # one-time, hoisted precompute
    cumulative, intensity, alphas = nsc_forward(x, horizon, prep)
    jax.block_until_ready((cumulative, alphas))

    # correctness check against a pure-JAX f32 reference
    cum_ref, _, alphas_ref = nsc_reference(x, horizon, params)
    if jnp.dtype(prep["compute_dtype"]) == jnp.dtype(jnp.bfloat16):
        rtol, atol = 5e-2, 1e-2                       # bf16 matmuls/tanh on v6e/v7x
    else:
        rtol, atol = 1e-4, 1e-5                       # full f32 path (v5e etc.)
    np.testing.assert_allclose(np.asarray(cumulative), np.asarray(cum_ref),
                               rtol=rtol, atol=atol)
    np.testing.assert_allclose(np.asarray(alphas), np.asarray(alphas_ref),
                               rtol=rtol, atol=atol)
    assert cumulative.shape == (N, RISKS, K)
    assert alphas.shape == (N, K)
    assert intensity is None

    print("KERNEL_OK")
</pallas_src>

<mosaic_0001>
module attributes {stable_mosaic.version = 11 : i64} {
  func.func @nsc_kernel(%arg0: i32, %arg1: memref<16x128xf32, #tpu.memory_space<vmem>>, %arg2: memref<1x128xf32, #tpu.memory_space<vmem>>, %arg3: memref<128x16xf32, #tpu.memory_space<vmem>>, %arg4: memref<128x1xf32, #tpu.memory_space<vmem>>, %arg5: memref<128x128xf32, #tpu.memory_space<vmem>>, %arg6: memref<128x1xf32, #tpu.memory_space<vmem>>, %arg7: memref<128x128xf32, #tpu.memory_space<vmem>>, %arg8: memref<128x1xf32, #tpu.memory_space<vmem>>, %arg9: memref<3x128xf32, #tpu.memory_space<vmem>>, %arg10: memref<3x1xf32, #tpu.memory_space<vmem>>, %arg11: memref<312x1xf32, #tpu.memory_space<vmem>>, %arg12: memref<312x1xf32, #tpu.memory_space<vmem>>, %arg13: memref<3x312xf32, #tpu.memory_space<vmem>>, %arg14: memref<3x1xf32, #tpu.memory_space<vmem>>, %arg15: memref<3x1xf32, #tpu.memory_space<vmem>>, %arg16: memref<3x128xf32, #tpu.memory_space<vmem>>, %arg17: memref<3x128xf32, #tpu.memory_space<vmem>>) attributes {dimension_semantics = [#tpu.dimension_semantics<parallel>], iteration_bounds = array<i64: 1>, scalar_prefetch = 0 : i64, scratch_operands = 0 : i64, tpu.core_type = #tpu.core_type<tc>, window_params = [{transform_indices = @transform_0, window_bounds = array<i64: 16, 128>}, {transform_indices = @transform_1, window_bounds = array<i64: 1, 128>}, {pipeline_mode = #tpu.pipeline_mode<synchronous>, transform_indices = @transform_2, window_bounds = array<i64: 128, 16>}, {pipeline_mode = #tpu.pipeline_mode<synchronous>, transform_indices = @transform_3, window_bounds = array<i64: 128, 1>}, {pipeline_mode = #tpu.pipeline_mode<synchronous>, transform_indices = @transform_4, window_bounds = array<i64: 128, 128>}, {pipeline_mode = #tpu.pipeline_mode<synchronous>, transform_indices = @transform_5, window_bounds = array<i64: 128, 1>}, {pipeline_mode = #tpu.pipeline_mode<synchronous>, transform_indices = @transform_6, window_bounds = array<i64: 128, 128>}, {pipeline_mode = #tpu.pipeline_mode<synchronous>, transform_indices = @transform_7, window_bounds = array<i64: 128, 1>}, {pipeline_mode = #tpu.pipeline_mode<synchronous>, transform_indices = @transform_8, window_bounds = array<i64: 3, 128>}, {pipeline_mode = #tpu.pipeline_mode<synchronous>, transform_indices = @transform_9, window_bounds = array<i64: 3, 1>}, {pipeline_mode = #tpu.pipeline_mode<synchronous>, transform_indices = @transform_10, window_bounds = array<i64: 312, 1>}, {pipeline_mode = #tpu.pipeline_mode<synchronous>, transform_indices = @transform_11, window_bounds = array<i64: 312, 1>}, {pipeline_mode = #tpu.pipeline_mode<synchronous>, transform_indices = @transform_12, window_bounds = array<i64: 3, 312>}, {pipeline_mode = #tpu.pipeline_mode<synchronous>, transform_indices = @transform_13, window_bounds = array<i64: 3, 1>}, {pipeline_mode = #tpu.pipeline_mode<synchronous>, transform_indices = @transform_14, window_bounds = array<i64: 3, 1>}, {transform_indices = @transform_15, window_bounds = array<i64: 3, 128>}, {transform_indices = @transform_16, window_bounds = array<i64: 3, 128>}]} {
    %c0 = arith.constant 0 : index
    %c0_0 = arith.constant 0 : index
    %0 = vector.load %arg1[%c0, %c0_0] : memref<16x128xf32, #tpu.memory_space<vmem>>, vector<16x128xf32>
    %c0_1 = arith.constant 0 : index
    %c0_2 = arith.constant 0 : index
    %1 = vector.load %arg2[%c0_1, %c0_2] : memref<1x128xf32, #tpu.memory_space<vmem>>, vector<1x128xf32>
    %c0_3 = arith.constant 0 : index
    %c0_4 = arith.constant 0 : index
    %2 = vector.load %arg3[%c0_3, %c0_4] : memref<128x16xf32, #tpu.memory_space<vmem>>, vector<128x16xf32>
    %cst = arith.constant dense<0.000000e+00> : vector<128x128xf32>
    %3 = tpu.matmul %2, %0, %cst {dimension_numbers = #tpu.dot_dimension_numbers<[1], [0], [0], [1], [0, 0, 1, 1], [], []>} : vector<128x16xf32>, vector<16x128xf32>, vector<128x128xf32> -> vector<128x128xf32>
    %c0_5 = arith.constant 0 : index
    %c0_6 = arith.constant 0 : index
    %4 = vector.load %arg4[%c0_5, %c0_6] : memref<128x1xf32, #tpu.memory_space<vmem>>, vector<128x1xf32>
    %5 = vector.broadcast %4 : vector<128x1xf32> to vector<128x128xf32>
    %6 = arith.addf %3, %5 : vector<128x128xf32>
    %cst_7 = arith.constant 0.000000e+00 : f32
    %cst_8 = arith.constant 6.000000e+00 : f32
    %7 = vector.broadcast %cst_7 : f32 to vector<128x128xf32>
    %8 = arith.maximumf %7, %6 : vector<128x128xf32>
    %9 = vector.broadcast %cst_8 : f32 to vector<128x128xf32>
    %10 = arith.minimumf %9, %8 : vector<128x128xf32>
    %c0_9 = arith.constant 0 : index
    %c0_10 = arith.constant 0 : index
    %11 = vector.load %arg5[%c0_9, %c0_10] : memref<128x128xf32, #tpu.memory_space<vmem>>, vector<128x128xf32>
    %cst_11 = arith.constant dense<0.000000e+00> : vector<128x128xf32>
    %12 = tpu.matmul %11, %10, %cst_11 {dimension_numbers = #tpu.dot_dimension_numbers<[1], [0], [0], [1], [0, 0, 1, 1], [], []>} : vector<128x128xf32>, vector<128x128xf32>, vector<128x128xf32> -> vector<128x128xf32>
    %c0_12 = arith.constant 0 : index
    %c0_13 = arith.constant 0 : index
    %13 = vector.load %arg6[%c0_12, %c0_13] : memref<128x1xf32, #tpu.memory_space<vmem>>, vector<128x1xf32>
    %14 = vector.broadcast %13 : vector<128x1xf32> to vector<128x128xf32>
    %15 = arith.addf %12, %14 : vector<128x128xf32>
    %cst_14 = arith.constant 0.000000e+00 : f32
    %cst_15 = arith.constant 6.000000e+00 : f32
    %16 = vector.broadcast %cst_14 : f32 to vector<128x128xf32>
    %17 = arith.maximumf %16, %15 : vector<128x128xf32>
    %18 = vector.broadcast %cst_15 : f32 to vector<128x128xf32>
    %19 = arith.minimumf %18, %17 : vector<128x128xf32>
    %c0_16 = arith.constant 0 : index
    %c0_17 = arith.constant 0 : index
    %20 = vector.load %arg7[%c0_16, %c0_17] : memref<128x128xf32, #tpu.memory_space<vmem>>, vector<128x128xf32>
    %cst_18 = arith.constant dense<0.000000e+00> : vector<128x128xf32>
    %21 = tpu.matmul %20, %19, %cst_18 {dimension_numbers = #tpu.dot_dimension_numbers<[1], [0], [0], [1], [0, 0, 1, 1], [], []>} : vector<128x128xf32>, vector<128x128xf32>, vector<128x128xf32> -> vector<128x128xf32>
    %c0_19 = arith.constant 0 : index
    %c0_20 = arith.constant 0 : index
    %22 = vector.load %arg8[%c0_19, %c0_20] : memref<128x1xf32, #tpu.memory_space<vmem>>, vector<128x1xf32>
    %23 = vector.broadcast %22 : vector<128x1xf32> to vector<128x128xf32>
    %24 = arith.addf %21, %23 : vector<128x128xf32>
    %cst_21 = arith.constant 0.000000e+00 : f32
    %cst_22 = arith.constant 6.000000e+00 : f32
    %25 = vector.broadcast %cst_21 : f32 to vector<128x128xf32>
    %26 = arith.maximumf %25, %24 : vector<128x128xf32>
    %27 = vector.broadcast %cst_22 : f32 to vector<128x128xf32>
    %28 = arith.minimumf %27, %26 : vector<128x128xf32>
    %c0_23 = arith.constant 0 : index
    %c0_24 = arith.constant 0 : index
    %29 = vector.load %arg9[%c0_23, %c0_24] : memref<3x128xf32, #tpu.memory_space<vmem>>, vector<3x128xf32>
    %cst_25 = arith.constant dense<0.000000e+00> : vector<3x128xf32>
    %30 = tpu.matmul %29, %28, %cst_25 {dimension_numbers = #tpu.dot_dimension_numbers<[1], [0], [0], [1], [0, 0, 1, 1], [], []>} : vector<3x128xf32>, vector<128x128xf32>, vector<3x128xf32> -> vector<3x128xf32>
    %c0_26 = arith.constant 0 : index
    %c0_27 = arith.constant 0 : index
    %31 = vector.load %arg10[%c0_26, %c0_27] : memref<3x1xf32, #tpu.memory_space<vmem>>, vector<3x1xf32>
    %32 = vector.broadcast %31 : vector<3x1xf32> to vector<3x128xf32>
    %33 = arith.addf %30, %32 : vector<3x128xf32>
    %cst_28 = arith.constant 0.000000e+00 : f32
    %cst_29 = arith.constant 6.000000e+00 : f32
    %34 = vector.broadcast %cst_28 : f32 to vector<3x128xf32>
    %35 = arith.maximumf %34, %33 : vector<3x128xf32>
    %36 = vector.broadcast %cst_29 : f32 to vector<3x128xf32>
    %37 = arith.minimumf %36, %35 : vector<3x128xf32>
    %c0_30 = arith.constant 0 : index
    %c0_31 = arith.constant 0 : index
    %38 = vector.load %arg16[%c0_30, %c0_31] : memref<3x128xf32, #tpu.memory_space<vmem>>, vector<3x128xf32>
    tpu.vector_store %arg16[%c0_30, %c0_31], %37 {strides = array<i32>} : memref<3x128xf32, #tpu.memory_space<vmem>>, vector<3x128xf32>,
    %c0_32 = arith.constant 0 : index
    %c0_33 = arith.constant 0 : index
    %39 = vector.load %arg11[%c0_32, %c0_33] : memref<312x1xf32, #tpu.memory_space<vmem>>, vector<312x1xf32>
    %c0_34 = arith.constant 0 : index
    %c0_35 = arith.constant 0 : index
    %40 = vector.load %arg12[%c0_34, %c0_35] : memref<312x1xf32, #tpu.memory_space<vmem>>, vector<312x1xf32>
    %41 = vector.broadcast %40 : vector<312x1xf32> to vector<312x128xf32>
    %42 = vector.broadcast %1 : vector<1x128xf32> to vector<312x128xf32>
    %43 = arith.mulf %41, %42 : vector<312x128xf32>
    %44 = vector.broadcast %39 : vector<312x1xf32> to vector<312x128xf32>
    %45 = arith.addf %44, %43 : vector<312x128xf32>
    %46 = math.tanh %45 : vector<312x128xf32>
    %c0_36 = arith.constant 0 : index
    %c0_37 = arith.constant 0 : index
    %47 = vector.load %arg13[%c0_36, %c0_37] : memref<3x312xf32, #tpu.memory_space<vmem>>, vector<3x312xf32>
    %cst_38 = arith.constant dense<0.000000e+00> : vector<3x128xf32>
    %48 = tpu.matmul %47, %46, %cst_38 {dimension_numbers = #tpu.dot_dimension_numbers<[1], [0], [0], [1], [0, 0, 1, 1], [], []>} : vector<3x312xf32>, vector<312x128xf32>, vector<3x128xf32> -> vector<3x128xf32>
    %c0_39 = arith.constant 0 : index
    %c0_40 = arith.constant 0 : index
    %49 = vector.load %arg14[%c0_39, %c0_40] : memref<3x1xf32, #tpu.memory_space<vmem>>, vector<3x1xf32>
    %50 = vector.broadcast %49 : vector<3x1xf32> to vector<3x128xf32>
    %51 = arith.addf %48, %50 : vector<3x128xf32>
    %cst_41 = arith.constant 2.000000e+01 : f32
    %52 = vector.broadcast %cst_41 : f32 to vector<3x128xf32>
    %53 = arith.cmpf ogt, %51, %52 : vector<3x128xf32>
    %cst_42 = arith.constant 2.000000e+01 : f32
    %54 = vector.broadcast %cst_42 : f32 to vector<3x128xf32>
    %55 = arith.minimumf %51, %54 : vector<3x128xf32>
    %56 = math.exp %55 : vector<3x128xf32>
    %57 = math.log1p %56 : vector<3x128xf32>
    %58 = arith.select %53, %51, %57 : vector<3x128xi1>, vector<3x128xf32>
    %c0_43 = arith.constant 0 : index
    %c0_44 = arith.constant 0 : index
    %59 = vector.load %arg15[%c0_43, %c0_44] : memref<3x1xf32, #tpu.memory_space<vmem>>, vector<3x1xf32>
    %60 = vector.broadcast %59 : vector<3x1xf32> to vector<3x128xf32>
    %61 = arith.subf %58, %60 : vector<3x128xf32>
    %c0_45 = arith.constant 0 : index
    %c0_46 = arith.constant 0 : index
    %62 = vector.load %arg17[%c0_45, %c0_46] : memref<3x128xf32, #tpu.memory_space<vmem>>, vector<3x128xf32>
    tpu.vector_store %arg17[%c0_45, %c0_46], %61 {strides = array<i32>} : memref<3x128xf32, #tpu.memory_space<vmem>>, vector<3x128xf32>,
    return
  }
  func.func @transform_0(%arg0: i32) -> (i32, i32) {
    %c0_i32 = arith.constant 0 : i32
    %c0_i32_0 = arith.constant 0 : i32
    return %c0_i32, %arg0 : i32, i32
  }
  func.func @transform_1(%arg0: i32) -> (i32, i32) {
    %c0_i32 = arith.constant 0 : i32
    %c0_i32_0 = arith.constant 0 : i32
    return %c0_i32, %arg0 : i32, i32
  }
  func.func @transform_2(%arg0: i32) -> (i32, i32) {
    %c0_i32 = arith.constant 0 : i32
    %c0_i32_0 = arith.constant 0 : i32
    %c0_i32_1 = arith.constant 0 : i32
    return %c0_i32, %c0_i32_0 : i32, i32
  }
  func.func @transform_3(%arg0: i32) -> (i32, i32) {
    %c0_i32 = arith.constant 0 : i32
    %c0_i32_0 = arith.constant 0 : i32
    %c0_i32_1 = arith.constant 0 : i32
    return %c0_i32, %c0_i32_0 : i32, i32
  }
  func.func @transform_4(%arg0: i32) -> (i32, i32) {
    %c0_i32 = arith.constant 0 : i32
    %c0_i32_0 = arith.constant 0 : i32
    %c0_i32_1 = arith.constant 0 : i32
    return %c0_i32, %c0_i32_0 : i32, i32
  }
  func.func @transform_5(%arg0: i32) -> (i32, i32) {
    %c0_i32 = arith.constant 0 : i32
    %c0_i32_0 = arith.constant 0 : i32
    %c0_i32_1 = arith.constant 0 : i32
    return %c0_i32, %c0_i32_0 : i32, i32
  }
  func.func @transform_6(%arg0: i32) -> (i32, i32) {
    %c0_i32 = arith.constant 0 : i32
    %c0_i32_0 = arith.constant 0 : i32
    %c0_i32_1 = arith.constant 0 : i32
    return %c0_i32, %c0_i32_0 : i32, i32
  }
  func.func @transform_7(%arg0: i32) -> (i32, i32) {
    %c0_i32 = arith.constant 0 : i32
    %c0_i32_0 = arith.constant 0 : i32
    %c0_i32_1 = arith.constant 0 : i32
    return %c0_i32, %c0_i32_0 : i32, i32
  }
  func.func @transform_8(%arg0: i32) -> (i32, i32) {
    %c0_i32 = arith.constant 0 : i32
    %c0_i32_0 = arith.constant 0 : i32
    %c0_i32_1 = arith.constant 0 : i32
    return %c0_i32, %c0_i32_0 : i32, i32
  }
  func.func @transform_9(%arg0: i32) -> (i32, i32) {
    %c0_i32 = arith.constant 0 : i32
    %c0_i32_0 = arith.constant 0 : i32
    %c0_i32_1 = arith.constant 0 : i32
    return %c0_i32, %c0_i32_0 : i32, i32
  }
  func.func @transform_10(%arg0: i32) -> (i32, i32) {
    %c0_i32 = arith.constant 0 : i32
    %c0_i32_0 = arith.constant 0 : i32
    %c0_i32_1 = arith.constant 0 : i32
    return %c0_i32, %c0_i32_0 : i32, i32
  }
  func.func @transform_11(%arg0: i32) -> (i32, i32) {
    %c0_i32 = arith.constant 0 : i32
    %c0_i32_0 = arith.constant 0 : i32
    %c0_i32_1 = arith.constant 0 : i32
    return %c0_i32, %c0_i32_0 : i32, i32
  }
  func.func @transform_12(%arg0: i32) -> (i32, i32) {
    %c0_i32 = arith.constant 0 : i32
    %c0_i32_0 = arith.constant 0 : i32
    %c0_i32_1 = arith.constant 0 : i32
    return %c0_i32, %c0_i32_0 : i32, i32
  }
  func.func @transform_13(%arg0: i32) -> (i32, i32) {
    %c0_i32 = arith.constant 0 : i32
    %c0_i32_0 = arith.constant 0 : i32
    %c0_i32_1 = arith.constant 0 : i32
    return %c0_i32, %c0_i32_0 : i32, i32
  }
  func.func @transform_14(%arg0: i32) -> (i32, i32) {
    %c0_i32 = arith.constant 0 : i32
    %c0_i32_0 = arith.constant 0 : i32
    %c0_i32_1 = arith.constant 0 : i32
    return %c0_i32, %c0_i32_0 : i32, i32
  }
  func.func @transform_15(%arg0: i32) -> (i32, i32) {
    %c0_i32 = arith.constant 0 : i32
    %c0_i32_0 = arith.constant 0 : i32
    return %c0_i32, %arg0 : i32, i32
  }
  func.func @transform_16(%arg0: i32) -> (i32, i32) {
    %c0_i32 = arith.constant 0 : i32
    %c0_i32_0 = arith.constant 0 : i32
    return %c0_i32, %arg0 : i32, i32
  }
}

</mosaic_0001>

<bundles_post_ra>
// kernel: tpu_custom_call.1
= control target key start
LH: loop header
LB: loop body
LE: loop exit
PB: predicated region body
PF: predicated region fallthrough
CT: control target
= control target key end

     0   :  { %s3529_s0 = inlined_call_operand.vmem [shape: f32[16,128], index: 0, kind: input, shape index: {}]   ;;  %s3530_s1 = inlined_call_operand.vmem [shape: f32[1,128], index: 1, kind: input, shape index: {}]   ;;  %s3531_s2 = inlined_call_operand.vmem [shape: f32[128,16], index: 2, kind: input, shape index: {}]   ;;  %s3532_s3 = inlined_call_operand.vmem [shape: f32[128,1], index: 3, kind: input, shape index: {}]   ;;  %s3533_s4 = inlined_call_operand.vmem [shape: f32[128,128], index: 4, kind: input, shape index: {}]   ;;  %s3534_s5 = inlined_call_operand.vmem [shape: f32[128,1], index: 5, kind: input, shape index: {}]   ;;  %s3535_s6 = inlined_call_operand.vmem [shape: f32[128,128], index: 6, kind: input, shape index: {}]   ;;  %s3536_s7 = inlined_call_operand.vmem [shape: f32[128,1], index: 7, kind: input, shape index: {}]   ;;  %s3537_s8 = inlined_call_operand.vmem [shape: f32[3,128], index: 8, kind: input, shape index: {}]   ;;  %s3538_s9 = inlined_call_operand.vmem [shape: f32[3,1], index: 9, kind: input, shape index: {}]   ;;  %s3539_s10 = inlined_call_operand.vmem [shape: f32[312,1], index: 10, kind: input, shape index: {}]   ;;  %s3540_s11 = inlined_call_operand.vmem [shape: f32[312,1], index: 11, kind: input, shape index: {}]   ;;  %s3541_s12 = inlined_call_operand.vmem [shape: f32[3,312], index: 12, kind: input, shape index: {}]   ;;  %s3542_s13 = inlined_call_operand.vmem [shape: f32[3,1], index: 13, kind: input, shape index: {}]   ;;  %s3543_s14 = inlined_call_operand.vmem [shape: f32[3,1], index: 14, kind: input, shape index: {}]   ;;  %s3544_s15 = inlined_call_operand.hbm [shape: f32[3,128], index: 15, kind: output, shape index: {0}]   ;;  %s3545_s16 = inlined_call_operand.hbm [shape: f32[3,128], index: 16, kind: output, shape index: {1}]  }
   0x1   :  { %3561 = sst [smem:[#allocation41_spill]] %s3529_s0 }
   0x2   :  { %22 = vsyncpa [#allocation3], 0  ;;  %v75_v0 = vld [vmem:[%s3532_s3 + $0x10] sm:$0xff]  ;;  %v73_v1 = vld [vmem:[%s3532_s3] sm:$0xff]  ;;  %s3562_s27 = sld [smem:[#allocation41_spill]]  ;;  %vm169_vm0 = vcmask 130048  }
   0x3   :  { %v2474_v3 = vmov 0   ;;  %v57_v6 = vld [vmem:[%s3531_s2] sm:$0xff]  ;;  %v76_v7 = vld [vmem:[%s3532_s3 + $0x18] sm:$0xff]  ;;  %v74_v8 = vld [vmem:[%s3532_s3 + $0x8] sm:$0xff] }
   0x4   :  { %2341 = vset.pattern.permute.xlu1 %v2474_v3  ;;  %2340 = vset.pattern.permute.xlu0 %v2474_v3  ;;  %v58_v9 = vld [vmem:[%s3531_s2 + $0x8] sm:$0xff]  ;;  %v59_v10 = vld [vmem:[%s3531_s2 + $0x10] sm:$0xff]  ;;  %v77_v12 = vld [vmem:[%s3532_s3 + $0x20] sm:$0xff] }
   0x5   :  { %101 = vperm.xlu1 %2341, %v75_v0   ;;  %91 = vperm.xlu0 %2340, %v73_v1   ;;  %v78_v11 = vld [vmem:[%s3532_s3 + $0x28] sm:$0xff]  ;;  %v60_v13 = vld [vmem:[%s3531_s2 + $0x18] sm:$0xff]  ;;  %v61_v14 = vld [vmem:[%s3531_s2 + $0x20] sm:$0xff] }
   0x6   :  { %2013 = vmatprep.mubr.msk.f32.mxu0 %vm169_vm0, %v57_v6  ;;  %v80_v15 = vld [vmem:[%s3532_s3 + $0x38] sm:$0xff]  ;;  %v79_v16 = vld [vmem:[%s3532_s3 + $0x30] sm:$0xff]  ;;  %v62_v17 = vld [vmem:[%s3531_s2 + $0x28] sm:$0xff] }
   0x7   :  { %v63_v18 = vld [vmem:[%s3531_s2 + $0x30] sm:$0xff]  ;;  %v82_v19 = vld [vmem:[%s3532_s3 + $0x48] sm:$0xff]  ;;  %v81_v20 = vld [vmem:[%s3532_s3 + $0x40] sm:$0xff] }
   0x8   :  { %v54_v2 = vld [vmem:[%s3562_s27] sm:$0xff]  ;;  %v55_v4 = vld [vmem:[%s3562_s27 + $0x8] sm:$0xff]  ;;  %v64_v21 = vld [vmem:[%s3531_s2 + $0x38] sm:$0xff] }
   0x9   :  { %v2201_v5 = vpack.c.bf16 %v55_v4, %v54_v2  ;;  %106 = vperm.xlu1 %2341, %v76_v7   ;;  %96 = vperm.xlu0 %2340, %v74_v8   ;;  %v65_v22 = vld [vmem:[%s3531_s2 + $0x40] sm:$0xff]  ;;  %v84_v23 = vld [vmem:[%s3532_s3 + $0x58] sm:$0xff]  ;;  %v83_v24 = vld [vmem:[%s3532_s3 + $0x50] sm:$0xff] }
   0xa   :  { %v66_v25 = vld [vmem:[%s3531_s2 + $0x48] sm:$0xff]  ;;  %v67_v26 = vld [vmem:[%s3531_s2 + $0x50] sm:$0xff]  ;;  %v85_v28 = vld [vmem:[%s3532_s3 + $0x60] sm:$0xff] }
   0xb   :  { %2202 = vmatprep.subr.bf16.mxu0 %v2201_v5  ;;  %v86_v27 = vld [vmem:[%s3532_s3 + $0x68] sm:$0xff]  ;;  %v68_v29 = vld [vmem:[%s3531_s2 + $0x58] sm:$0xff]  ;;  %v69_v30 = vld [vmem:[%s3531_s2 + $0x60] sm:$0xff] }
   0xc   :  { %2204 = vmatpush3.bf16.msra.mxu0 %v2201_v5  ;;  %v88_v31 = vld [vmem:[%s3532_s3 + $0x78] sm:$0xff]  ;;  %v87_v32 = vld [vmem:[%s3532_s3 + $0x70] sm:$0xff]  ;;  %v70_v33 = vld [vmem:[%s3531_s2 + $0x68] sm:$0xff] }
   0xd   :  { %116 = vperm.xlu1 %2341, %v78_v11   ;;  %111 = vperm.xlu0 %2340, %v77_v12   ;;  %v71_v34 = vld [vmem:[%s3531_s2 + $0x70] sm:$0xff]  ;;  %v412_v35 = vld [vmem:[%s3534_s5 + $0x8] sm:$0xff]  ;;  %v411_v36 = vld [vmem:[%s3534_s5] sm:$0xff] }
   0xf   :  { %2014 = vmatmul.mubr.msk.f32.vlgmr.msra.gmra.mrb[0].mxu0 %vm169_vm0, %v58_v9 }
  0x10   :  { %2016 = vmatprep.mubr.msk.f32.mxu0 %vm169_vm0, %v59_v10 }
  0x11   :  { %126 = vperm.xlu1 %2341, %v80_v15   ;;  %121 = vperm.xlu0 %2340, %v79_v16  }
  0x13   :  { %2017 = vmatmul.mubr.msk.f32.gmra.mrb[2].mxu0 %vm169_vm0, %v60_v13 }
  0x14   :  { %2019 = vmatprep.mubr.msk.f32.mxu0 %vm169_vm0, %v61_v14 }
  0x15   :  { %136 = vperm.xlu1 %2341, %v82_v19   ;;  %131 = vperm.xlu0 %2340, %v81_v20  }
  0x17   :  { %2020 = vmatmul.mubr.msk.f32.gmra.mrb[4].mxu0 %vm169_vm0, %v62_v17 }
  0x18   :  { %2022 = vmatprep.mubr.msk.f32.mxu0 %vm169_vm0, %v63_v18 }
  0x19   :  { %146 = vperm.xlu1 %2341, %v84_v23   ;;  %141 = vperm.xlu0 %2340, %v83_v24  }
  0x1b   :  { %2023 = vmatmul.mubr.msk.f32.gmra.mrb[6].mxu0 %vm169_vm0, %v64_v21 }
  0x1c   :  { %2025 = vmatprep.mubr.msk.f32.mxu0 %vm169_vm0, %v65_v22 }
  0x1d   :  { %156 = vperm.xlu1 %2341, %v86_v27   ;;  %151 = vperm.xlu0 %2340, %v85_v28  }
  0x1f   :  { %2026 = vmatmul.mubr.msk.f32.gmra.mrb[8].mxu0 %vm169_vm0, %v66_v25 }
  0x20   :  { %2028 = vmatprep.mubr.msk.f32.mxu0 %vm169_vm0, %v67_v26 }
  0x21   :  { %166 = vperm.xlu1 %2341, %v88_v31   ;;  %161 = vperm.xlu0 %2340, %v87_v32  }
  0x23   :  { %2029 = vmatmul.mubr.msk.f32.gmra.mrb[10].mxu0 %vm169_vm0, %v68_v29 }
  0x24   :  { %2031 = vmatprep.mubr.msk.f32.mxu0 %vm169_vm0, %v69_v30 }
  0x27   :  { %2032 = vmatmul.mubr.msk.f32.gmra.mrb[12].mxu0 %vm169_vm0, %v70_v33 }
  0x28   :  { %23 = vsyncpa [#allocation5], 0  ;;  %2034 = vmatprep.mubr.msk.f32.mxu0 %vm169_vm0, %v71_v34  ;;  %v72_v37 = vld [vmem:[%s3531_s2 + $0x78] sm:$0xff]  ;;  %434 = vperm.xlu1 %2341, %v412_v35   ;;  %v413_v39 = vld [vmem:[%s3534_s5 + $0x10] sm:$0xff]  ;;  %vm2476_vm1 = vmmov 0   ;;  %vm1656_vm2 = vcmask 457728  }
  0x29   :  { %429 = vperm.xlu0 %2340, %v411_v36   ;;  %v414_v38 = vld [vmem:[%s3534_s5 + $0x18] sm:$0xff]  ;;  %v416_v40 = vld [vmem:[%s3534_s5 + $0x28] sm:$0xff]  ;;  %v415_v41 = vld [vmem:[%s3534_s5 + $0x20] sm:$0xff]  ;;  %s2478_s20 = smov [#allocation2]  }
  0x2a   :  { %v418_v42 = vld [vmem:[%s3534_s5 + $0x38] sm:$0xff]  ;;  %v417_v43 = vld [vmem:[%s3534_s5 + $0x30] sm:$0xff]  ;;  %v420_v44 = vld [vmem:[%s3534_s5 + $0x48] sm:$0xff] }
  0x2b   :  { %2035 = vmatmul.mubr.msk.f32.gmra.mrb[14].mxu0 %vm169_vm0, %v72_v37  ;;  %v419_v45 = vld [vmem:[%s3534_s5 + $0x40] sm:$0xff]  ;;  %v422_v46 = vld [vmem:[%s3534_s5 + $0x58] sm:$0xff]  ;;  %v421_v47 = vld [vmem:[%s3534_s5 + $0x50] sm:$0xff] }
  0x2c   :  { %444 = vperm.xlu1 %2341, %v414_v38   ;;  %v424_v48 = vld [vmem:[%s3534_s5 + $0x68] sm:$0xff]  ;;  %v423_v49 = vld [vmem:[%s3534_s5 + $0x60] sm:$0xff]  ;;  %v426_v50 = vld [vmem:[%s3534_s5 + $0x78] sm:$0xff] }
  0x2d   :  { %439 = vperm.xlu0 %2340, %v413_v39   ;;  %v425_v51 = vld [vmem:[%s3534_s5 + $0x70] sm:$0xff]  ;;  %v701_v52 = vld [vmem:[%s3536_s7 + $0x8] sm:$0xff]  ;;  %v700_v53 = vld [vmem:[%s3536_s7] sm:$0xff] }
  0x2e   :  { %v703_v54 = vld [vmem:[%s3536_s7 + $0x18] sm:$0xff]  ;;  %v702_v55 = vld [vmem:[%s3536_s7 + $0x10] sm:$0xff]  ;;  %v1108_v56 = vld [vmem:[%s3540_s11 + $0x80] sm:$0xff] }
  0x2f   :  { %v704_v57 = vld [vmem:[%s3536_s7 + $0x20] sm:$0xff]  ;;  %v1109_v59 = vld [vmem:[%s3540_s11 + $0x88] sm:$0xff]  ;;  %v1110_v0 = vld [vmem:[%s3540_s11 + $0x90] sm:$0xff] }
  0x30   :  { %454 = vperm.xlu1 %2341, %v416_v40   ;;  %v1092_v58 = vld [vmem:[%s3540_s11] sm:$0xff]  ;;  %v1093_v61 = vld [vmem:[%s3540_s11 + $0x8] sm:$0xff]  ;;  %v1094_v2 = vld [vmem:[%s3540_s11 + $0x10] sm:$0xff] }
  0x31   :  { %449 = vperm.xlu0 %2340, %v415_v41   ;;  %v1069_v60 = vld [vmem:[%s3539_s10 + $0x80] sm:$0xff]  ;;  %v1070_v63 = vld [vmem:[%s3539_s10 + $0x88] sm:$0xff]  ;;  %v1111_v3 = vld [vmem:[%s3540_s11 + $0x98] sm:$0xff] }
  0x32   :  { %v1053_v62 = vld [vmem:[%s3539_s10] sm:$0xff]  ;;  %v1054_v1 = vld [vmem:[%s3539_s10 + $0x8] sm:$0xff]  ;;  %v1071_v4 = vld [vmem:[%s3539_s10 + $0x90] sm:$0xff] }
  0x33   :  { %v1095_v5 = vld [vmem:[%s3540_s11 + $0x18] sm:$0xff]  ;;  %v1055_v6 = vld [vmem:[%s3539_s10 + $0x10] sm:$0xff]  ;;  %v1112_v8 = vld [vmem:[%s3540_s11 + $0xa0] sm:$0xff] }
  0x34   :  { %464 = vperm.xlu1 %2341, %v418_v42   ;;  %v1072_v7 = vld [vmem:[%s3539_s10 + $0x98] sm:$0xff]  ;;  %v705_v10 = vld [vmem:[%s3536_s7 + $0x28] sm:$0xff]  ;;  %v1096_v13 = vld [vmem:[%s3540_s11 + $0x20] sm:$0xff] }
  0x35   :  { %459 = vperm.xlu0 %2340, %v417_v43   ;;  %v1056_v9 = vld [vmem:[%s3539_s10 + $0x18] sm:$0xff]  ;;  %v1113_v11 = vld [vmem:[%s3540_s11 + $0xa8] sm:$0xff]  ;;  %v1073_v15 = vld [vmem:[%s3539_s10 + $0xa0] sm:$0xff] }
  0x36   :  { %v1097_v12 = vld [vmem:[%s3540_s11 + $0x28] sm:$0xff]  ;;  %v1057_v17 = vld [vmem:[%s3539_s10 + $0x20] sm:$0xff]  ;;  %v1115_v18 = vld [vmem:[%s3540_s11 + $0xb8] sm:$0xff] }
  0x37   :  { %v1074_v14 = vld [vmem:[%s3539_s10 + $0xa8] sm:$0xff]  ;;  %v1114_v19 = vld [vmem:[%s3540_s11 + $0xb0] sm:$0xff]  ;;  %v707_v20 = vld [vmem:[%s3536_s7 + $0x38] sm:$0xff] }
  0x38   :  { %474 = vperm.xlu1 %2341, %v420_v44   ;;  %v1058_v16 = vld [vmem:[%s3539_s10 + $0x28] sm:$0xff]  ;;  %v706_v21 = vld [vmem:[%s3536_s7 + $0x30] sm:$0xff]  ;;  %v1099_v24 = vld [vmem:[%s3540_s11 + $0x38] sm:$0xff] }
  0x39   :  { %469 = vperm.xlu0 %2340, %v419_v45   ;;  %v1098_v25 = vld [vmem:[%s3540_s11 + $0x30] sm:$0xff]  ;;  %v395_v26 = vld [vmem:[%s3533_s4] sm:$0xff]  ;;  %v1076_v29 = vld [vmem:[%s3539_s10 + $0xb8] sm:$0xff] }
  0x3a   :  { %2069 = vmatprep.mubr.f32.mxu1 %v395_v26  ;;  %v1075_v30 = vld [vmem:[%s3539_s10 + $0xb0] sm:$0xff]  ;;  %v1060_v33 = vld [vmem:[%s3539_s10 + $0x38] sm:$0xff]  ;;  %v1117_v37 = vld [vmem:[%s3540_s11 + $0xc8] sm:$0xff] }
  0x3b   :  { %v1059_v34 = vld [vmem:[%s3539_s10 + $0x30] sm:$0xff]  ;;  %v1116_v38 = vld [vmem:[%s3540_s11 + $0xc0] sm:$0xff]  ;;  %v709_v41 = vld [vmem:[%s3536_s7 + $0x48] sm:$0xff] }
  0x3c   :  { %484 = vperm.xlu1 %2341, %v422_v46   ;;  %v708_v42 = vld [vmem:[%s3536_s7 + $0x40] sm:$0xff]  ;;  %v1101_v45 = vld [vmem:[%s3540_s11 + $0x48] sm:$0xff] }
  0x3d   :  { %479 = vperm.xlu0 %2340, %v421_v47   ;;  %v1100_v46 = vld [vmem:[%s3540_s11 + $0x40] sm:$0xff] }
  0x40   :  { %494 = vperm.xlu1 %2341, %v424_v48  }
  0x41   :  { %489 = vperm.xlu0 %2340, %v423_v49   ;;  %v1078_v49 = vld [vmem:[%s3539_s10 + $0xc8] sm:$0xff] }
  0x44   :  { %504 = vperm.xlu1 %2341, %v426_v50   ;;  %v1077_v50 = vld [vmem:[%s3539_s10 + $0xc0] sm:$0xff] }
  0x45   :  { %499 = vperm.xlu0 %2340, %v425_v51  }
  0x48   :  { %723 = vperm.xlu1 %2341, %v701_v52  }
  0x49   :  { %718 = vperm.xlu0 %2340, %v700_v53   ;;  %v1062_v53 = vld [vmem:[%s3539_s10 + $0x48] sm:$0xff] }
  0x4c   :  { %733 = vperm.xlu1 %2341, %v703_v54   ;;  %v1061_v54 = vld [vmem:[%s3539_s10 + $0x40] sm:$0xff] }
  0x4d   :  { %728 = vperm.xlu0 %2340, %v702_v55  }
  0x50   :  { %1213 = vperm.xlu1 %2341, %v1108_v56  }
  0x51   :  { %738 = vperm.xlu0 %2340, %v704_v57   ;;  %v1119_v57 = vld [vmem:[%s3540_s11 + $0xd8] sm:$0xff] }
  0x54   :  { %1133 = vperm.xlu1 %2341, %v1092_v58   ;;  %v1118_v58 = vld [vmem:[%s3540_s11 + $0xd0] sm:$0xff] }
  0x55   :  { %1218 = vperm.xlu0 %2340, %v1109_v59  }
  0x58   :  { %1453 = vperm.xlu1 %2341, %v1069_v60  }
  0x59   :  { %1138 = vperm.xlu0 %2340, %v1093_v61   ;;  %v711_v61 = vld [vmem:[%s3536_s7 + $0x58] sm:$0xff] }
  0x5c   :  { %1373 = vperm.xlu1 %2341, %v1053_v62   ;;  %v710_v62 = vld [vmem:[%s3536_s7 + $0x50] sm:$0xff] }
  0x5d   :  { %1458 = vperm.xlu0 %2340, %v1070_v63  }
  0x60   :  { %1223 = vperm.xlu1 %2341, %v1110_v0  }
  0x61   :  { %1378 = vperm.xlu0 %2340, %v1054_v1   ;;  %v1103_v1 = vld [vmem:[%s3540_s11 + $0x58] sm:$0xff] }
  0x64   :  { %1143 = vperm.xlu1 %2341, %v1094_v2   ;;  %v1102_v2 = vld [vmem:[%s3540_s11 + $0x50] sm:$0xff] }
  0x65   :  { %1228 = vperm.xlu0 %2340, %v1111_v3  }
  0x68   :  { %1463 = vperm.xlu1 %2341, %v1071_v4  }
  0x69   :  { %1148 = vperm.xlu0 %2340, %v1095_v5   ;;  %v1080_v5 = vld [vmem:[%s3539_s10 + $0xd8] sm:$0xff] }
  0x6c   :  { %1383 = vperm.xlu1 %2341, %v1055_v6   ;;  %v1079_v6 = vld [vmem:[%s3539_s10 + $0xd0] sm:$0xff] }
  0x6d   :  { %1468 = vperm.xlu0 %2340, %v1072_v7  }
  0x70   :  { %1233 = vperm.xlu1 %2341, %v1112_v8  }
  0x71   :  { %1388 = vperm.xlu0 %2340, %v1056_v9   ;;  %v1064_v9 = vld [vmem:[%s3539_s10 + $0x58] sm:$0xff] }
  0x74   :  { %743 = vperm.xlu1 %2341, %v705_v10   ;;  %v1063_v10 = vld [vmem:[%s3539_s10 + $0x50] sm:$0xff] }
  0x75   :  { %1238 = vperm.xlu0 %2340, %v1113_v11  }
  0x78   :  { %1158 = vperm.xlu1 %2341, %v1097_v12  }
  0x79   :  { %1153 = vperm.xlu0 %2340, %v1096_v13   ;;  %v1121_v13 = vld [vmem:[%s3540_s11 + $0xe8] sm:$0xff] }
  0x7c   :  { %1478 = vperm.xlu1 %2341, %v1074_v14   ;;  %v1120_v14 = vld [vmem:[%s3540_s11 + $0xe0] sm:$0xff] }
  0x7d   :  { %1473 = vperm.xlu0 %2340, %v1073_v15  }
  0x80   :  { %1398 = vperm.xlu1 %2341, %v1058_v16  }
  0x81   :  { %1393 = vperm.xlu0 %2340, %v1057_v17   ;;  %v1125_v17 = vld [vmem:[%s3540_s11 + $0x108] sm:$0xff] }
  0x84   :  { %1248 = vperm.xlu1 %2341, %v1115_v18   ;;  %v2833_v22 = vpop.permute.xlu1 %101  ;;  %v2835_v23 = vpop.permute.xlu0 %91  ;;  %v1124_v18 = vld [vmem:[%s3540_s11 + $0x100] sm:$0xff] }
  0x85   :  { %1243 = vperm.xlu0 %2340, %v1114_v19  }
  0x88   :  { %753 = vperm.xlu1 %2341, %v707_v20   ;;  %v2846_v27 = vpop.permute.xlu1 %106  ;;  %v2848_v28 = vpop.permute.xlu0 %96 }
  0x89   :  { %748 = vperm.xlu0 %2340, %v706_v21   ;;  %v713_v21 = vld [vmem:[%s3536_s7 + $0x68] sm:$0xff] }
  0x8c   :  { %1168 = vperm.xlu1 %2341, %v1099_v24   ;;  %v2856_v31 = vpop.permute.xlu1 %116  ;;  %v2858_v32 = vpop.permute.xlu0 %111  ;;  %v712_v24 = vld [vmem:[%s3536_s7 + $0x60] sm:$0xff] }
  0x8d   :  { %1163 = vperm.xlu0 %2340, %v1098_v25  }
  0x90   :  { %1488 = vperm.xlu1 %2341, %v1076_v29   ;;  %v2866_v35 = vpop.permute.xlu1 %126  ;;  %v2868_v36 = vpop.permute.xlu0 %121  ;;  %v1105_v29 = vld [vmem:[%s3540_s11 + $0x68] sm:$0xff] }
  0x91   :  { %1483 = vperm.xlu0 %2340, %v1075_v30   ;;  %v1104_v30 = vld [vmem:[%s3540_s11 + $0x60] sm:$0xff] }
  0x94   :  { %1408 = vperm.xlu1 %2341, %v1060_v33   ;;  %v2876_v39 = vpop.permute.xlu1 %136  ;;  %v2878_v40 = vpop.permute.xlu0 %131 }
  0x95   :  { %1403 = vperm.xlu0 %2340, %v1059_v34  }
  0x98   :  { %1258 = vperm.xlu1 %2341, %v1117_v37   ;;  %v2886_v43 = vpop.permute.xlu1 %146  ;;  %v2888_v44 = vpop.permute.xlu0 %141  ;;  %v1082_v37 = vld [vmem:[%s3539_s10 + $0xe8] sm:$0xff] }
  0x99   :  { %1253 = vperm.xlu0 %2340, %v1116_v38   ;;  %v1081_v38 = vld [vmem:[%s3539_s10 + $0xe0] sm:$0xff] }
  0x9c   :  { %763 = vperm.xlu1 %2341, %v709_v41   ;;  %v2896_v47 = vpop.permute.xlu1 %156  ;;  %v2898_v48 = vpop.permute.xlu0 %151 }
  0x9d   :  { %758 = vperm.xlu0 %2340, %v708_v42  }
  0xa0   :  { %1178 = vperm.xlu1 %2341, %v1101_v45   ;;  %v2906_v51 = vpop.permute.xlu1 %166  ;;  %v2908_v52 = vpop.permute.xlu0 %161  ;;  %v3021_v45 = vld [vmem:[%s3530_s1] ss:$0 sm:$0xff] }
  0xa1   :  { %1173 = vperm.xlu0 %2340, %v1100_v46   ;;  %v1086_v46 = vld [vmem:[%s3539_s10 + $0x108] sm:$0xff] }
  0xa4   :  { %1498 = vperm.xlu1 %2341, %v1078_v49   ;;  %v1085_v49 = vld [vmem:[%s3539_s10 + $0x100] sm:$0xff] }
  0xa5   :  { %1493 = vperm.xlu0 %2340, %v1077_v50  }
  0xa7   :  { %v2916_v55 = vpop.permute.xlu1 %434 }
  0xa8   :  { %v2918_v56 = vpop.permute.xlu0 %429  ;;  %1418 = vperm.xlu1 %2341, %v1062_v53  }
  0xa9   :  { %1413 = vperm.xlu0 %2340, %v1061_v54  }
  0xab   :  { %v2926_v59 = vpop.permute.xlu1 %444 }
  0xac   :  { %v2928_v60 = vpop.permute.xlu0 %439  ;;  %1268 = vperm.xlu1 %2341, %v1119_v57   ;;  %v1066_v57 = vld [vmem:[%s3539_s10 + $0x68] sm:$0xff] }
  0xad   :  { %1263 = vperm.xlu0 %2340, %v1118_v58   ;;  %v1065_v58 = vld [vmem:[%s3539_s10 + $0x60] sm:$0xff] }
  0xaf   :  { %v2936_v63 = vpop.permute.xlu1 %454 }
  0xb0   :  { %v2938_v0 = vpop.permute.xlu0 %449  ;;  %773 = vperm.xlu1 %2341, %v711_v61  }
  0xb1   :  { %768 = vperm.xlu0 %2340, %v710_v62  }
  0xb3   :  { %v2946_v3 = vpop.permute.xlu1 %464 }
  0xb4   :  { %v2948_v4 = vpop.permute.xlu0 %459  ;;  %1188 = vperm.xlu1 %2341, %v1103_v1  }
  0xb5   :  { %1183 = vperm.xlu0 %2340, %v1102_v2  }
  0xb7   :  { %v2956_v7 = vpop.permute.xlu1 %474 }
  0xb8   :  { %v2958_v8 = vpop.permute.xlu0 %469  ;;  %1508 = vperm.xlu1 %2341, %v1080_v5  }
  0xb9   :  { %1503 = vperm.xlu0 %2340, %v1079_v6   ;;  %v1123_v6 = vld [vmem:[%s3540_s11 + $0xf8] sm:$0xff] }
  0xbb   :  { %v2966_v11 = vpop.permute.xlu1 %484 }
  0xbc   :  { %v2968_v12 = vpop.permute.xlu0 %479  ;;  %1428 = vperm.xlu1 %2341, %v1064_v9   ;;  %v1122_v9 = vld [vmem:[%s3540_s11 + $0xf0] sm:$0xff] }
  0xbd   :  { %1423 = vperm.xlu0 %2340, %v1063_v10  }
  0xbf   :  { %v2976_v15 = vpop.permute.xlu1 %494 }
  0xc0   :  { %v2978_v16 = vpop.permute.xlu0 %489  ;;  %1278 = vperm.xlu1 %2341, %v1121_v13  }
  0xc1   :  { %1273 = vperm.xlu0 %2340, %v1120_v14  }
  0xc3   :  { %v2986_v19 = vpop.permute.xlu1 %504 }
  0xc4   :  { %v2988_v20 = vpop.permute.xlu0 %499  ;;  %1298 = vperm.xlu1 %2341, %v1125_v17  }
  0xc5   :  { %1293 = vperm.xlu0 %2340, %v1124_v18  }
  0xc7   :  { %v2996_v25 = vpop.permute.xlu1 %723 }
  0xc8   :  { %3563 = vst [vmem:[#allocation8_spill] sm:$0xff] %v2996_v25  ;;  %v2998_v26 = vpop.permute.xlu0 %718  ;;  %783 = vperm.xlu1 %2341, %v713_v21   ;;  %v1127_v21 = vld [vmem:[%s3540_s11 + $0x118] sm:$0xff] }
  0xc9   :  { %3564 = vst [vmem:[#allocation9_spill] sm:$0xff] %v2998_v26  ;;  %778 = vperm.xlu0 %2340, %v712_v24   ;;  %v1126_v24 = vld [vmem:[%s3540_s11 + $0x110] sm:$0xff] }
  0xcb   :  { %v3006_v33 = vpop.permute.xlu1 %733 }
  0xcc   :  { %3565 = vst [vmem:[#allocation10_spill] sm:$0xff] %v3006_v33  ;;  %v3008_v34 = vpop.permute.xlu0 %728  ;;  %1198 = vperm.xlu1 %2341, %v1105_v29  }
  0xcd   :  { %3566 = vst [vmem:[#allocation11_spill] sm:$0xff] %v3008_v34  ;;  %1193 = vperm.xlu0 %2340, %v1104_v30  }
  0xcf   :  { %v1214_v41 = vpop.permute.xlu1 %1213 }
  0xd0   :  { %v3016_v42 = vpop.permute.xlu0 %738  ;;  %1518 = vperm.xlu1 %2341, %v1082_v37   ;;  %v1348_v54 = vmul.f32 %v3021_v45, %v1214_v41  ;;  %v715_v41 = vld [vmem:[%s3536_s7 + $0x78] sm:$0xff] }
  0xd1   :  { %3567 = vst [vmem:[#allocation12_spill] sm:$0xff] %v3016_v42  ;;  %1513 = vperm.xlu0 %2340, %v1081_v38  }
  0xd3   :  { %v1134_v50 = vpop.permute.xlu1 %1133 }
  0xd4   :  { %v1219_v53 = vpop.permute.xlu0 %1218  ;;  %1538 = vperm.xlu1 %2341, %v1086_v46   ;;  %v1332_v1 = vmul.f32 %v3021_v45, %v1134_v50  ;;  %v714_v46 = vld [vmem:[%s3536_s7 + $0x70] sm:$0xff] }
  0xd5   :  { %1533 = vperm.xlu0 %2340, %v1085_v49   ;;  %v1349_v2 = vmul.f32 %v3021_v45, %v1219_v53 }
  0xd7   :  { %v1454_v61 = vpop.permute.xlu1 %1453 }
  0xd8   :  { %v1139_v62 = vpop.permute.xlu0 %1138  ;;  %v1582_v5 = vadd.f32 %v1454_v61, %v1348_v54  ;;  %1438 = vperm.xlu1 %2341, %v1066_v57  }
  0xd9   :  { %1433 = vperm.xlu0 %2340, %v1065_v58   ;;  %v1333_v14 = vmul.f32 %v3021_v45, %v1139_v62 }
  0xda   :  { %2343 = vtanh.f32 %v1582_v5 }
  0xdb   :  { %v1374_v10 = vpop.permute.xlu1 %1373 }
  0xdc   :  { %v1459_v13 = vpop.permute.xlu0 %1458  ;;  %v1566_v17 = vadd.f32 %v1374_v10, %v1332_v1  ;;  %1288 = vperm.xlu1 %2341, %v1123_v6   ;;  %v1107_v1 = vld [vmem:[%s3540_s11 + $0x78] sm:$0xff] }
  0xdd   :  { %v1583_v18 = vadd.f32 %v1459_v13, %v1349_v2  ;;  %1283 = vperm.xlu0 %2340, %v1122_v9   ;;  %v1106_v2 = vld [vmem:[%s3540_s11 + $0x70] sm:$0xff] }
  0xdf   :  { %2345 = vtanh.f32 %v1583_v18  ;;  %v1224_v29 = vpop.permute.xlu1 %1223 }
  0xe0   :  { %v1379_v30 = vpop.permute.xlu0 %1378  ;;  %2347 = vtanh.f32 %v1566_v17  ;;  %1308 = vperm.xlu1 %2341, %v1127_v21  }
  0xe1   :  { %v1567_v37 = vadd.f32 %v1379_v30, %v1333_v14  ;;  %1303 = vperm.xlu0 %2340, %v1126_v24  }
  0xe2   :  { %v2015_v38 = vpop.f32.mrb[0].mxu0 }
  0xe3   :  { %2349 = vtanh.f32 %v1567_v37  ;;  %v290_v49 = vadd.f32 %v2015_v38, %v2848_v28  ;;  %v284_v50 = vpop.f32.mrb[1].mxu0  ;;  %v1144_v54 = vpop.permute.xlu1 %1143  ;;  %v1350_v28 = vmul.f32 %v3021_v45, %v1224_v29 }
  0xe4   :  { %v285_v53 = vadd.f32 %v284_v50, %v2835_v23  ;;  %v1229_v57 = vpop.permute.xlu0 %1228  ;;  %793 = vperm.xlu1 %2341, %v715_v41   ;;  %v3067_v9 = vpop.eup %2343  ;;  %v1334_v30 = vmul.f32 %v3021_v45, %v1144_v54 }
  0xe5   :  { %v364_v58 = vmax.f32 %v290_v49, 0.0  ;;  %788 = vperm.xlu0 %2340, %v714_v46  }
  0xe6   :  { %v363_v61 = vmax.f32 %v285_v53, 0.0  ;;  %v2018_v62 = vpop.f32.mrb[2].mxu0  ;;  %v1083_v53 = vld [vmem:[%s3539_s10 + $0xf0] sm:$0xff] }
  0xe7   :  { %v380_v5 = vmin.f32 %v364_v58, 6.0  ;;  %v300_v23 = vadd.f32 %v2018_v62, %v2846_v27  ;;  %v294_v6 = vpop.f32.mrb[3].mxu0  ;;  %v1464_v14 = vpop.permute.xlu1 %1463  ;;  %v1084_v27 = vld [vmem:[%s3539_s10 + $0xf8] sm:$0xff] }
  0xe8   :  { %v379_v10 = vmin.f32 %v363_v61, 6.0  ;;  %v295_v13 = vadd.f32 %v294_v6, %v2833_v22  ;;  %v1149_v17 = vpop.permute.xlu0 %1148  ;;  %v1584_v21 = vadd.f32 %v1464_v14, %v1350_v28  ;;  %1208 = vperm.xlu1 %2341, %v1107_v1   ;;  %v1351_v22 = vmul.f32 %v3021_v45, %v1229_v57 }
  0xe9   :  { %v366_v18 = vmax.f32 %v300_v23, 0.0  ;;  %1203 = vperm.xlu0 %2340, %v1106_v2   ;;  %v3070_v24 = vpop.eup %2345 }
  0xea   :  { %v365_v29 = vmax.f32 %v295_v13, 0.0  ;;  %v2021_v37 = vpop.f32.mrb[4].mxu0  ;;  %v2205_v38 = vpack.c.bf16 %v380_v5, %v379_v10  ;;  %v3076_v41 = vpop.eup %2347  ;;  %v1088_v10 = vld [vmem:[%s3539_s10 + $0x118] sm:$0xff]  ;;  %2351 = vtanh.f32 %v1584_v21  ;;  %v1335_v13 = vmul.f32 %v3021_v45, %v1149_v17 }
  0xeb   :  { %v382_v46 = vmin.f32 %v366_v18, 6.0  ;;  %v310_v49 = vadd.f32 %v2021_v37, %v2856_v31  ;;  %v304_v50 = vpop.f32.mrb[5].mxu0  ;;  %v1384_v62 = vpop.permute.xlu1 %1383 }
  0xec   :  { %v381_v58 = vmin.f32 %v365_v29, 6.0  ;;  %v305_v61 = vadd.f32 %v304_v50, %v2858_v32  ;;  %2206 = vmatprep.subr.bf16.mxu1 %v2205_v38  ;;  %v1469_v1 = vpop.permute.xlu0 %1468  ;;  %v1568_v28 = vadd.f32 %v1384_v62, %v1334_v30  ;;  %1528 = vperm.xlu1 %2341, %v1084_v27   ;;  %v1087_v29 = vld [vmem:[%s3539_s10 + $0x110] sm:$0xff]  ;;  %v1068_v50 = vld [vmem:[%s3539_s10 + $0x78] sm:$0xff] }
  0xed   :  { %v3086_v2 = vpop.eup %2349  ;;  %v368_v57 = vmax.f32 %v310_v49, 0.0  ;;  %v1585_v5 = vadd.f32 %v1469_v1, %v1351_v22  ;;  %2208 = vmatpush3.bf16.msra.mxu1 %v2205_v38  ;;  %1523 = vperm.xlu0 %2340, %v1083_v53  }
  0xee   :  { %v2209_v31 = vpack.c.bf16 %v382_v46, %v381_v58  ;;  %v367_v23 = vmax.f32 %v305_v61, 0.0  ;;  %v2024_v6 = vpop.f32.mrb[6].mxu0  ;;  %v1067_v61 = vld [vmem:[%s3539_s10 + $0x70] sm:$0xff] }
  0xef   :  { %v384_v14 = vmin.f32 %v368_v57, 6.0  ;;  %v320_v18 = vadd.f32 %v2024_v6, %v2866_v35  ;;  %v314_v30 = vpop.f32.mrb[7].mxu0  ;;  %2353 = vtanh.f32 %v1585_v5  ;;  %v1234_v27 = vpop.permute.xlu1 %1233 }
  0xf0   :  { %v383_v37 = vmin.f32 %v367_v23, 6.0  ;;  %v315_v38 = vadd.f32 %v314_v30, %v2868_v36  ;;  %2210 = vmatprep.subr.bf16.mxu1 %v2209_v31  ;;  %v1389_v22 = vpop.permute.xlu0 %1388  ;;  %1548 = vperm.xlu1 %2341, %v1088_v10   ;;  %2355 = vtanh.f32 %v1568_v28 }
  0xf1   :  { %v370_v46 = vmax.f32 %v320_v18, 0.0  ;;  %v1569_v49 = vadd.f32 %v1389_v22, %v1335_v13  ;;  %2212 = vmatpush3.bf16.msra.mxu1 %v2209_v31  ;;  %1543 = vperm.xlu0 %2340, %v1087_v29  }
  0xf2   :  { %v2213_v17 = vpack.c.bf16 %v384_v14, %v383_v37  ;;  %v369_v21 = vmax.f32 %v315_v38, 0.0  ;;  %v2027_v35 = vpop.f32.mrb[8].mxu0 }
  0xf3   :  { %v386_v53 = vmin.f32 %v370_v46, 6.0  ;;  %2357 = vtanh.f32 %v1569_v49  ;;  %v330_v36 = vadd.f32 %v2027_v35, %v2876_v39  ;;  %v324_v58 = vpop.f32.mrb[9].mxu0  ;;  %v3107_v57 = vpop.permute.xlu1 %743  ;;  %v1129_v39 = vld [vmem:[%s3540_s11 + $0x128] sm:$0xff] }
  0xf4   :  { %v385_v62 = vmin.f32 %v369_v21, 6.0  ;;  %v325_v1 = vadd.f32 %v324_v58, %v2878_v40  ;;  %2214 = vmatprep.subr.bf16.mxu1 %v2213_v17  ;;  %3568 = vst [vmem:[#allocation13_spill] sm:$0xff] %v3107_v57  ;;  %v1239_v28 = vpop.permute.xlu0 %1238  ;;  %1448 = vperm.xlu1 %2341, %v1068_v50   ;;  %v1128_v40 = vld [vmem:[%s3540_s11 + $0x120] sm:$0xff]  ;;  %v3117_v38 = vpop.eup %2351 }
  0xf5   :  { %v372_v5 = vmax.f32 %v330_v36, 0.0  ;;  %2216 = vmatpush3.bf16.msra.mxu1 %v2213_v17  ;;  %1443 = vperm.xlu0 %2340, %v1067_v61   ;;  %v1353_v35 = vmul.f32 %v3021_v45, %v1239_v28  ;;  %v1089_v58 = vld [vmem:[%s3539_s10 + $0x120] sm:$0xff] }
  0xf6   :  { %v2217_v31 = vpack.c.bf16 %v386_v53, %v385_v62  ;;  %v371_v23 = vmax.f32 %v325_v1, 0.0  ;;  %v2030_v6 = vpop.f32.mrb[10].mxu0 }
  0xf7   :  { %v388_v10 = vmin.f32 %v372_v5, 6.0  ;;  %v340_v13 = vadd.f32 %v2030_v6, %v2886_v43  ;;  %v334_v14 = vpop.f32.mrb[11].mxu0  ;;  %v1159_v29 = vpop.permute.xlu1 %1158  ;;  %v1352_v43 = vmul.f32 %v3021_v45, %v1234_v27 }
  0xf8   :  { %v387_v18 = vmin.f32 %v371_v23, 6.0  ;;  %v335_v30 = vadd.f32 %v334_v14, %v2888_v44  ;;  %2218 = vmatprep.subr.bf16.mxu1 %v2217_v31  ;;  %v1154_v37 = vpop.permute.xlu0 %1153  ;;  %1318 = vperm.xlu1 %2341, %v1129_v39   ;;  %v1090_v44 = vld [vmem:[%s3539_s10 + $0x128] sm:$0xff] }
  0xf9   :  { %v374_v22 = vmax.f32 %v340_v13, 0.0  ;;  %2220 = vmatpush3.bf16.msra.mxu1 %v2217_v31  ;;  %v3119_v46 = vpop.eup %2353  ;;  %1313 = vperm.xlu0 %2340, %v1128_v40  }
  0xfa   :  { %v2221_v49 = vpack.c.bf16 %v388_v10, %v387_v18  ;;  %v373_v17 = vmax.f32 %v335_v30, 0.0  ;;  %v2033_v21 = vpop.f32.mrb[12].mxu0  ;;  %v3132_v61 = vpop.eup %2355  ;;  %v1337_v10 = vmul.f32 %v3021_v45, %v1159_v29  ;;  %v1336_v18 = vmul.f32 %v3021_v45, %v1154_v37  ;;  %v1130_v29 = vld [vmem:[%s3540_s11 + $0x130] sm:$0xff] }
  0xfb   :  { %v390_v50 = vmin.f32 %v374_v22, 6.0  ;;  %v350_v53 = vadd.f32 %v2033_v21, %v2896_v47  ;;  %v344_v36 = vpop.f32.mrb[13].mxu0  ;;  %v1479_v5 = vpop.permute.xlu1 %1478 }
  0xfc   :  { %v389_v62 = vmin.f32 %v373_v17, 6.0  ;;  %v345_v1 = vadd.f32 %v344_v36, %v2898_v48  ;;  %2222 = vmatprep.subr.bf16.mxu1 %v2221_v49  ;;  %v1474_v31 = vpop.permute.xlu0 %1473  ;;  %v1587_v47 = vadd.f32 %v1479_v5, %v1353_v35  ;;  %1558 = vperm.xlu1 %2341, %v1090_v44   ;;  %v1091_v48 = vld [vmem:[%s3539_s10 + $0x130] sm:$0xff]  ;;  %s1827_s10 = sshll.u32 %s2478_s20, 4  ;;  %s1828_s10 = int_to_ptr.vmem [resolvable:$true] %s1827_s10 }
  0xfd   :  { %v3135_v28 = vpop.eup %2357  ;;  %v376_v23 = vmax.f32 %v350_v53, 0.0  ;;  %v1586_v6 = vadd.f32 %v1474_v31, %v1352_v43  ;;  %2224 = vmatpush3.bf16.msra.mxu1 %v2221_v49  ;;  %1553 = vperm.xlu0 %2340, %v1089_v58   ;;  %s2426_s21 = scalar_lea.vmem %s1828_s10, 64  ;;  %p2431_p1 = scmp.lt.s32.totalorder %s1828_s10, %s1828_s10 }
  0xfe   :  { %v2225_v39 = vpack.c.bf16 %v390_v50, %v389_v62  ;;  %v375_v13 = vmax.f32 %v345_v1, 0.0  ;;  %v2036_v14 = vpop.f32.mrb[14].mxu0  ;;  %2359 = vtanh.f32 %v1587_v47  ;;  %p2427_p0 = scmp.ne.s32.totalorder %s1828_s10, %s2426_s21  ;;  %p2432_p2 = scmp.lt.s32.totalorder %s2426_s21, %s2426_s21 }
  0xff   :  { %v392_v30 = vmin.f32 %v376_v23, 6.0  ;;  %v360_v22 = vadd.f32 %v2036_v14, %v2906_v51  ;;  %v354_v43 = vpop.f32.mrb[15].mxu0  ;;  %2361 = vtanh.f32 %v1586_v6  ;;  %v1399_v21 = vpop.permute.xlu1 %1398  ;;  %v974_v51 = vld [vmem:[%s3538_s9] sm:$0x7]  ;;  %v397_v14 = vld [vmem:[%s3533_s4 + $0x10] sm:$0xff] }
 0x100   :  { %v391_v49 = vmin.f32 %v375_v13, 6.0  ;;  %v355_v17 = vadd.f32 %v354_v43, %v2908_v52  ;;  %2226 = vmatprep.subr.bf16.mxu1 %v2225_v39  ;;  %v1394_v44 = vpop.permute.xlu0 %1393  ;;  %v1571_v50 = vadd.f32 %v1399_v21, %v1337_v10  ;;  %1563 = vperm.xlu1 %2341, %v1091_v48   ;;  %v1646_v52 = vld [vmem:[%s3542_s13] sm:$0x7]  ;;  %v396_v10 = vld [vmem:[%s3533_s4 + $0x8] sm:$0xff]  ;;  %v398_v43 = vld [vmem:[%s3533_s4 + $0x18] sm:$0xff]  ;;  %p2433_p3 = por %p2432_p2, %p2431_p1 }
 0x101   :  { %v378_v35 = vmax.f32 %v360_v22, 0.0  ;;  %v1570_v53 = vadd.f32 %v1394_v44, %v1336_v18  ;;  %2228 = vmatpush3.bf16.msra.mxu1 %v2225_v39  ;;  %1323 = vperm.xlu0 %2340, %v1130_v29   ;;  %v1813_v23 = vld [vmem:[%s3543_s14] sm:$0x7] }
 0x102   :  { %v2229_v37 = vpack.c.bf16 %v392_v30, %v391_v49  ;;  %v377_v36 = vmax.f32 %v355_v17, 0.0  ;;  %2363 = vtanh.f32 %v1571_v50  ;;  %v399_v49 = vld [vmem:[%s3533_s4 + $0x20] sm:$0xff]  ;;  %p2434_p4 = pnand %p2433_p3, %p2427_p0 }
 0x103   :  { %v394_v58 = vmin.f32 %v378_v35, 6.0  ;;  %2365 = vtanh.f32 %v1570_v53  ;;  %v1249_v1 = vpop.permute.xlu1 %1248 }
 0x104   :  { %v393_v62 = vmin.f32 %v377_v36, 6.0  ;;  %2230 = vmatprep.subr.bf16.mxu1 %v2229_v37  ;;  %v1244_v5 = vpop.permute.xlu0 %1243  ;;  %977 = vperm.xlu1 %2341, %v974_v51   ;;  %v1355_v17 = vmul.f32 %v3021_v45, %v1249_v1  ;;  %v400_v36 = vld [vmem:[%s3533_s4 + $0x28] sm:$0xff]  ;;  %v401_v51 = vld [vmem:[%s3533_s4 + $0x30] sm:$0xff] }
 0x105   :  { %2232 = vmatpush3.bf16.msra.mxu1 %v2229_v37  ;;  %1649 = vperm.xlu0 %2340, %v1646_v52   ;;  %v1354_v21 = vmul.f32 %v3021_v45, %v1244_v5 }
 0x106   :  { %v2233_v31 = vpack.c.bf16 %v394_v58, %v393_v62 }
 0x107   :  { %v3158_v47 = vpop.permute.xlu1 %753 }
 0x108   :  { %2234 = vmatprep.subr.bf16.mxu1 %v2233_v31  ;;  %3569 = vst [vmem:[#allocation14_spill] sm:$0xff] %v3158_v47  ;;  %v3160_v6 = vpop.permute.xlu0 %748  ;;  %v3162_v39 = vpop.eup %2359 }
 0x109   :  { %3570 = vst [vmem:[#allocation15_spill] sm:$0xff] %v3160_v6  ;;  %2236 = vmatpush3.bf16.msra.mxu1 %v2233_v31  ;;  %v3167_v13 = vpop.eup %2361  ;;  %1816 = vperm.xlu0 %2340, %v1813_v23   ;;  %v402_v23 = vld [vmem:[%s3533_s4 + $0x38] sm:$0xff] }
 0x10b   :  { %v1169_v18 = vpop.permute.xlu1 %1168 }
 0x10c   :  { %2070 = vmatmul.mubr.f32.vlgmr.msra.gmra.mrb[0].mxu1 %v396_v10  ;;  %v1164_v30 = vpop.permute.xlu0 %1163  ;;  %v3174_v22 = vpop.eup %2363  ;;  %v1339_v58 = vmul.f32 %v3021_v45, %v1169_v18  ;;  %v403_v10 = vld [vmem:[%s3533_s4 + $0x40] sm:$0xff] }
 0x10d   :  { %3571 = vst [vmem:[#allocation16_spill] sm:$0xff] %v3174_v22  ;;  %2072 = vmatprep.mubr.f32.mxu1 %v397_v14  ;;  %v3179_v29 = vpop.eup %2365  ;;  %v1338_v52 = vmul.f32 %v3021_v45, %v1164_v30  ;;  %v404_v30 = vld [vmem:[%s3533_s4 + $0x48] sm:$0xff] }
 0x10e   :  { %3572 = vst [vmem:[#allocation17_spill] sm:$0xff] %v3179_v29 }
 0x10f   :  { %v1489_v35 = vpop.permute.xlu1 %1488 }
 0x110   :  { %2073 = vmatmul.mubr.f32.gmra.mrb[2].mxu1 %v398_v43  ;;  %v1484_v50 = vpop.permute.xlu0 %1483  ;;  %v1589_v53 = vadd.f32 %v1489_v35, %v1355_v17  ;;  %v405_v43 = vld [vmem:[%s3533_s4 + $0x50] sm:$0xff]  ;;  %v406_v35 = vld [vmem:[%s3533_s4 + $0x58] sm:$0xff] }
 0x111   :  { %v1588_v37 = vadd.f32 %v1484_v50, %v1354_v21  ;;  %2075 = vmatprep.mubr.f32.mxu1 %v399_v49 }
 0x112   :  { %2367 = vtanh.f32 %v1589_v53  ;;  %v407_v53 = vld [vmem:[%s3533_s4 + $0x60] sm:$0xff] }
 0x113   :  { %2369 = vtanh.f32 %v1588_v37  ;;  %v1409_v62 = vpop.permute.xlu1 %1408 }
 0x114   :  { %2076 = vmatmul.mubr.f32.gmra.mrb[4].mxu1 %v400_v36  ;;  %v1404_v1 = vpop.permute.xlu0 %1403  ;;  %v1573_v5 = vadd.f32 %v1409_v62, %v1339_v58 }
 0x115   :  { %v1572_v31 = vadd.f32 %v1404_v1, %v1338_v52  ;;  %2078 = vmatprep.mubr.f32.mxu1 %v401_v51  ;;  %v408_v52 = vld [vmem:[%s3533_s4 + $0x68] sm:$0xff]  ;;  %v409_v1 = vld [vmem:[%s3533_s4 + $0x70] sm:$0xff] }
 0x116   :  { %2371 = vtanh.f32 %v1573_v5 }
 0x117   :  { %2373 = vtanh.f32 %v1572_v31  ;;  %v1259_v14 = vpop.permute.xlu1 %1258 }
 0x118   :  { %2079 = vmatmul.mubr.f32.gmra.mrb[6].mxu1 %v402_v23  ;;  %v1254_v18 = vpop.permute.xlu0 %1253  ;;  %v1357_v5 = vmul.f32 %v3021_v45, %v1259_v14 }
 0x119   :  { %2081 = vmatprep.mubr.f32.mxu1 %v403_v10  ;;  %v1356_v31 = vmul.f32 %v3021_v45, %v1254_v18 }
 0x11b   :  { %v3208_v49 = vpop.permute.xlu1 %763 }
 0x11c   :  { %2082 = vmatmul.mubr.f32.gmra.mrb[8].mxu1 %v404_v30  ;;  %3573 = vst [vmem:[#allocation18_spill] sm:$0xff] %v3208_v49  ;;  %v3210_v17 = vpop.permute.xlu0 %758  ;;  %v3212_v21 = vpop.eup %2367 }
 0x11d   :  { %3574 = vst [vmem:[#allocation19_spill] sm:$0xff] %v3210_v17  ;;  %3575 = vst [vmem:[#allocation20_spill] sm:$0xff] %v3212_v21  ;;  %2084 = vmatprep.mubr.f32.mxu1 %v405_v43  ;;  %v3217_v50 = vpop.eup %2369 }
 0x11e   :  { %3576 = vst [vmem:[#allocation21_spill] sm:$0xff] %v3217_v50 }
 0x11f   :  { %v1179_v36 = vpop.permute.xlu1 %1178 }
 0x120   :  { %2085 = vmatmul.mubr.f32.gmra.mrb[10].mxu1 %v406_v35  ;;  %v1174_v51 = vpop.permute.xlu0 %1173  ;;  %v3224_v58 = vpop.eup %2371  ;;  %v1341_v37 = vmul.f32 %v3021_v45, %v1179_v36 }
 0x121   :  { %3577 = vst [vmem:[#allocation22_spill] sm:$0xff] %v3224_v58  ;;  %2087 = vmatprep.mubr.f32.mxu1 %v407_v53  ;;  %v3229_v62 = vpop.eup %2373  ;;  %v410_v53 = vld [vmem:[%s3533_s4 + $0x78] sm:$0xff]  ;;  %v1340_v44 = vmul.f32 %v3021_v45, %v1174_v51 }
 0x122   :  { %3578 = vst [vmem:[#allocation23_spill] sm:$0xff] %v3229_v62 }
 0x123   :  { %v1499_v10 = vpop.permute.xlu1 %1498 }
 0x124   :  { %2088 = vmatmul.mubr.f32.gmra.mrb[12].mxu1 %v408_v52  ;;  %v1494_v30 = vpop.permute.xlu0 %1493  ;;  %v1591_v43 = vadd.f32 %v1499_v10, %v1357_v5 }
 0x125   :  { %v1590_v35 = vadd.f32 %v1494_v30, %v1356_v31  ;;  %2090 = vmatprep.mubr.f32.mxu1 %v409_v1 }
 0x126   :  { %2375 = vtanh.f32 %v1591_v43 }
 0x127   :  { %2377 = vtanh.f32 %v1590_v35  ;;  %v1419_v14 = vpop.permute.xlu1 %1418 }
 0x128   :  { %2091 = vmatmul.mubr.f32.gmra.mrb[14].mxu1 %v410_v53  ;;  %v1414_v18 = vpop.permute.xlu0 %1413  ;;  %v1575_v23 = vadd.f32 %v1419_v14, %v1341_v37 }
 0x129   :  { %v1574_v52 = vadd.f32 %v1414_v18, %v1340_v44 }
 0x12a   :  { %2379 = vtanh.f32 %v1575_v23 }
 0x12b   :  { %2381 = vtanh.f32 %v1574_v52  ;;  %v3243_v5 = vpop.permute.xlu1 %1268 }
 0x12c   :  { %v3245_v1 = vpop.permute.xlu0 %1263 }
 0x12f   :  { %v3247_v31 = vpop.permute.xlu1 %773 }
 0x130   :  { %3579 = vst [vmem:[#allocation24_spill] sm:$0xff] %v3247_v31  ;;  %v3249_v10 = vpop.permute.xlu0 %768  ;;  %v3251_v36 = vpop.eup %2375 }
 0x131   :  { %3580 = vst [vmem:[#allocation25_spill] sm:$0xff] %v3249_v10  ;;  %3581 = vst [vmem:[#allocation26_spill] sm:$0xff] %v3251_v36  ;;  %v3253_v51 = vpop.eup %2377 }
 0x132   :  { %3582 = vst [vmem:[#allocation27_spill] sm:$0xff] %v3253_v51 }
 0x133   :  { %v3257_v43 = vpop.permute.xlu1 %1188 }
 0x134   :  { %v3259_v44 = vpop.permute.xlu0 %1183  ;;  %v3261_v37 = vpop.eup %2379 }
 0x135   :  { %3583 = vst [vmem:[#allocation28_spill] sm:$0xff] %v3261_v37  ;;  %v3263_v23 = vpop.eup %2381 }
 0x136   :  { %3584 = vst [vmem:[#allocation29_spill] sm:$0xff] %v3263_v23 }
 0x137   :  { %v3267_v53 = vpop.permute.xlu1 %1508 }
 0x138   :  { %v3269_v14 = vpop.permute.xlu0 %1503 }
 0x13b   :  { %v3271_v18 = vpop.permute.xlu1 %1428 }
 0x13c   :  { %v3273_v52 = vpop.permute.xlu0 %1423 }
 0x13f   :  { %v3275_v30 = vpop.permute.xlu1 %1278 }
 0x140   :  { %v3277_v48 = vpop.permute.xlu0 %1273 }
 0x143   :  { %v1299_v40 = vpop.permute.xlu1 %1298 }
 0x144   :  { %v1294_v27 = vpop.permute.xlu0 %1293  ;;  %v1365_v49 = vmul.f32 %v3021_v45, %v1299_v40 }
 0x145   :  { %v1364_v6 = vmul.f32 %v3021_v45, %v1294_v27 }
 0x147   :  { %v3279_v32 = vpop.permute.xlu1 %783 }
 0x148   :  { %3585 = vst [vmem:[#allocation30_spill] sm:$0xff] %v3279_v32  ;;  %v3281_v54 = vpop.permute.xlu0 %778 }
 0x149   :  { %3586 = vst [vmem:[#allocation31_spill] sm:$0xff] %v3281_v54 }
 0x14b   :  { %v3283_v10 = vpop.permute.xlu1 %1198 }
 0x14c   :  { %v3285_v35 = vpop.permute.xlu0 %1193 }
 0x14f   :  { %v3287_v31 = vpop.permute.xlu1 %1518 }
 0x150   :  { %v3289_v17 = vpop.permute.xlu0 %1513 }
 0x153   :  { %v1539_v47 = vpop.permute.xlu1 %1538 }
 0x154   :  { %v1534_v42 = vpop.permute.xlu0 %1533  ;;  %v1599_v57 = vadd.f32 %v1539_v47, %v1365_v49 }
 0x155   :  { %v1598_v34 = vadd.f32 %v1534_v42, %v1364_v6 }
 0x156   :  { %2383 = vtanh.f32 %v1599_v57 }
 0x157   :  { %2385 = vtanh.f32 %v1598_v34  ;;  %v3293_v32 = vpop.permute.xlu1 %1438 }
 0x158   :  { %v3295_v54 = vpop.permute.xlu0 %1433 }
 0x15b   :  { %v3297_v33 = vpop.permute.xlu1 %1288 }
 0x15c   :  { %v3299_v26 = vpop.permute.xlu0 %1283 }
 0x15f   :  { %v1309_v25 = vpop.permute.xlu1 %1308 }
 0x160   :  { %v1304_v23 = vpop.permute.xlu0 %1303  ;;  %v3301_v37 = vpop.eup %2383  ;;  %v1367_v51 = vmul.f32 %v3021_v45, %v1309_v25 }
 0x161   :  { %3587 = vst [vmem:[#allocation32_spill] sm:$0xff] %v3301_v37  ;;  %v3303_v40 = vpop.eup %2385  ;;  %v1366_v36 = vmul.f32 %v3021_v45, %v1304_v23 }
 0x162   :  { %3588 = vst [vmem:[#allocation33_spill] sm:$0xff] %v3303_v40 }
 0x163   :  { %v3307_v42 = vpop.permute.xlu1 %793 }
 0x164   :  { %3589 = vst [vmem:[#allocation34_spill] sm:$0xff] %v3307_v42  ;;  %v3309_v34 = vpop.permute.xlu0 %788  ;;  %v684_v42 = vld [vmem:[%s3535_s6] sm:$0xff] }
 0x165   :  { %3590 = vst [vmem:[#allocation35_spill] sm:$0xff] %v3309_v34  ;;  %2125 = vmatprep.mubr.f32.mxu0 %v684_v42 }
 0x167   :  { %v3311_v57 = vpop.permute.xlu1 %1208 }
 0x168   :  { %3591 = vst [vmem:[#allocation36_spill] sm:$0xff] %v3311_v57  ;;  %v3313_v47 = vpop.permute.xlu0 %1203 }
 0x169   :  { %3592 = vst [vmem:[#allocation37_spill] sm:$0xff] %v3313_v47 }
 0x16b   :  { %v3315_v6 = vpop.permute.xlu1 %1528 }
 0x16c   :  { %v3317_v49 = vpop.permute.xlu0 %1523 }
 0x16d   :  { %3593 = vst [vmem:[#allocation38_spill] sm:$0xff] %v3317_v49 }
 0x16f   :  { %v1549_v62 = vpop.permute.xlu1 %1548 }
 0x170   :  { %v1601_v58 = vadd.f32 %v1549_v62, %v1367_v51  ;;  %v1544_v50 = vpop.permute.xlu0 %1543 }
 0x171   :  { %v1600_v27 = vadd.f32 %v1544_v50, %v1366_v36 }
 0x172   :  { %2387 = vtanh.f32 %v1601_v58 }
 0x173   :  { %2389 = vtanh.f32 %v1600_v27 }
 0x17c   :  { %v3321_v40 = vpop.eup %2387 }
 0x17d   :  { %3594 = vst [vmem:[#allocation39_spill] sm:$0xff] %v3321_v40  ;;  %v3323_v37 = vpop.eup %2389 }
 0x17e   :  { %3595 = vst [vmem:[#allocation40_spill] sm:$0xff] %v3323_v37 }
 0x1df   :  { %v2071_v25 = vpop.f32.mrb[0].mxu1 }
 0x1e0   :  { %v579_v23 = vadd.f32 %v2071_v25, %v2916_v55  ;;  %v573_v62 = vpop.f32.mrb[1].mxu1 }
 0x1e1   :  { %v574_v50 = vadd.f32 %v573_v62, %v2918_v56 }
 0x1e2   :  { %v653_v58 = vmax.f32 %v579_v23, 0.0 }
 0x1e3   :  { %v652_v36 = vmax.f32 %v574_v50, 0.0  ;;  %v2074_v51 = vpop.f32.mrb[2].mxu1 }
 0x1e4   :  { %v669_v27 = vmin.f32 %v653_v58, 6.0  ;;  %v589_v21 = vadd.f32 %v2074_v51, %v2926_v59  ;;  %v583_v29 = vpop.f32.mrb[3].mxu1 }
 0x1e5   :  { %v668_v22 = vmin.f32 %v652_v36, 6.0  ;;  %v584_v34 = vadd.f32 %v583_v29, %v2928_v60 }
 0x1e6   :  { %v655_v37 = vmax.f32 %v589_v21, 0.0 }
 0x1e7   :  { %v2237_v40 = vpack.c.bf16 %v669_v27, %v668_v22  ;;  %v654_v47 = vmax.f32 %v584_v34, 0.0  ;;  %v2077_v42 = vpop.f32.mrb[4].mxu1 }
 0x1e8   :  { %v671_v49 = vmin.f32 %v655_v37, 6.0  ;;  %v599_v55 = vadd.f32 %v2077_v42, %v2936_v63  ;;  %v593_v25 = vpop.f32.mrb[5].mxu1 }
 0x1e9   :  { %v670_v57 = vmin.f32 %v654_v47, 6.0  ;;  %v594_v56 = vadd.f32 %v593_v25, %v2938_v0  ;;  %2238 = vmatprep.subr.bf16.mxu0 %v2237_v40 }
 0x1ea   :  { %v657_v23 = vmax.f32 %v599_v55, 0.0  ;;  %2240 = vmatpush3.bf16.msra.mxu0 %v2237_v40 }
 0x1eb   :  { %v2241_v62 = vpack.c.bf16 %v671_v49, %v670_v57  ;;  %v656_v59 = vmax.f32 %v594_v56, 0.0  ;;  %v2080_v50 = vpop.f32.mrb[6].mxu1 }
 0x1ec   :  { %v673_v58 = vmin.f32 %v657_v23, 6.0  ;;  %v609_v60 = vadd.f32 %v2080_v50, %v2946_v3  ;;  %v603_v29 = vpop.f32.mrb[7].mxu1 }
 0x1ed   :  { %v672_v22 = vmin.f32 %v656_v59, 6.0  ;;  %v604_v21 = vadd.f32 %v603_v29, %v2948_v4  ;;  %2242 = vmatprep.subr.bf16.mxu0 %v2241_v62 }
 0x1ee   :  { %v659_v37 = vmax.f32 %v609_v60, 0.0  ;;  %2244 = vmatpush3.bf16.msra.mxu0 %v2241_v62 }
 0x1ef   :  { %v2245_v63 = vpack.c.bf16 %v673_v58, %v672_v22  ;;  %v658_v34 = vmax.f32 %v604_v21, 0.0  ;;  %v2083_v47 = vpop.f32.mrb[8].mxu1 }
 0x1f0   :  { %v675_v0 = vmin.f32 %v659_v37, 6.0  ;;  %v619_v36 = vadd.f32 %v2083_v47, %v2956_v7  ;;  %v613_v40 = vpop.f32.mrb[9].mxu1 }
 0x1f1   :  { %v674_v57 = vmin.f32 %v658_v34, 6.0  ;;  %v614_v49 = vadd.f32 %v613_v40, %v2958_v8  ;;  %2246 = vmatprep.subr.bf16.mxu0 %v2245_v63 }
 0x1f2   :  { %v661_v51 = vmax.f32 %v619_v36, 0.0  ;;  %2248 = vmatpush3.bf16.msra.mxu0 %v2245_v63 }
 0x1f3   :  { %v2249_v3 = vpack.c.bf16 %v675_v0, %v674_v57  ;;  %v660_v27 = vmax.f32 %v614_v49, 0.0  ;;  %v2086_v42 = vpop.f32.mrb[10].mxu1 }
 0x1f4   :  { %v677_v4 = vmin.f32 %v661_v51, 6.0  ;;  %v629_v55 = vadd.f32 %v2086_v42, %v2966_v11  ;;  %v623_v25 = vpop.f32.mrb[11].mxu1 }
 0x1f5   :  { %v676_v56 = vmin.f32 %v660_v27, 6.0  ;;  %v624_v23 = vadd.f32 %v623_v25, %v2968_v12  ;;  %2250 = vmatprep.subr.bf16.mxu0 %v2249_v3  ;;  %v1343_v27 = vmul.f32 %v3021_v45, %v3257_v43  ;;  %v1361_v43 = vmul.f32 %v3021_v45, %v3275_v30 }
 0x1f6   :  { %v663_v62 = vmax.f32 %v629_v55, 0.0  ;;  %2252 = vmatpush3.bf16.msra.mxu0 %v2249_v3  ;;  %v1359_v3 = vmul.f32 %v3021_v45, %v3243_v5  ;;  %v686_v5 = vld [vmem:[%s3535_s6 + $0x10] sm:$0xff] }
 0x1f7   :  { %v2253_v7 = vpack.c.bf16 %v677_v4, %v676_v56  ;;  %v662_v59 = vmax.f32 %v624_v23, 0.0  ;;  %v2089_v50 = vpop.f32.mrb[12].mxu1  ;;  %v3596_v4 = vpack.c.bf16 %v3070_v24, %v3067_v9  ;;  %v1577_v25 = vadd.f32 %v3271_v18, %v1343_v27  ;;  %v1444_v23 = vpop.permute.xlu0 %1443 }
 0x1f8   :  { %v679_v8 = vmin.f32 %v663_v62, 6.0  ;;  %v639_v58 = vadd.f32 %v2089_v50, %v2976_v15  ;;  %v633_v60 = vpop.f32.mrb[13].mxu1  ;;  %v1593_v42 = vadd.f32 %v3267_v53, %v1359_v3  ;;  %v1360_v9 = vmul.f32 %v3021_v45, %v3277_v48  ;;  %v3603_v62 = vld [vmem:[#allocation37_spill] sm:$0xff]  ;;  %v691_v50 = vld [vmem:[%s3535_s6 + $0x38] sm:$0xff] }
 0x1f9   :  { %v678_v29 = vmin.f32 %v662_v59, 6.0  ;;  %v634_v22 = vadd.f32 %v633_v60, %v2978_v16  ;;  %2254 = vmatprep.subr.bf16.mxu0 %v2253_v7  ;;  %v3597_v24 = vpack.c.bf16 %v3086_v2, %v3076_v41  ;;  %v1595_v30 = vadd.f32 %v3287_v31, %v1361_v43  ;;  %v688_v41 = vld [vmem:[%s3535_s6 + $0x20] sm:$0xff]  ;;  %v3608_v60 = vld [vmem:[#allocation21_spill] sm:$0xff]  ;;  %v697_v43 = vld [vmem:[%s3535_s6 + $0x68] sm:$0xff] }
 0x1fa   :  { %v665_v21 = vmax.f32 %v639_v58, 0.0  ;;  %2256 = vmatpush3.bf16.msra.mxu0 %v2253_v7  ;;  %2391 = vtanh.f32 %v1593_v42  ;;  %v3598_v18 = vpack.c.bf16 %v3119_v46, %v3117_v38  ;;  %v1344_v2 = vmul.f32 %v3021_v45, %v3285_v35  ;;  %v3607_v58 = vld [vmem:[#allocation20_spill] sm:$0xff]  ;;  %v3617_v3 = vld [vmem:[#allocation29_spill] sm:$0xff]  ;;  %v696_v42 = vld [vmem:[%s3535_s6 + $0x60] sm:$0xff] }
 0x1fb   :  { %v2257_v11 = vpack.c.bf16 %v679_v8, %v678_v29  ;;  %v664_v37 = vmax.f32 %v634_v22, 0.0  ;;  %v2092_v63 = vpop.f32.mrb[14].mxu1  ;;  %v1594_v48 = vadd.f32 %v3289_v17, %v1360_v9  ;;  %v1363_v31 = vmul.f32 %v3021_v45, %v3297_v33  ;;  %v689_v17 = vld [vmem:[%s3535_s6 + $0x28] sm:$0xff]  ;;  %v1449_v33 = vpop.permute.xlu1 %1448  ;;  %v1644_v9 = vld [vmem:[%s3541_s12] sm:$0x77] }
 0x1fc   :  { %v681_v12 = vmin.f32 %v665_v21, 6.0  ;;  %v649_v34 = vadd.f32 %v2092_v63, %v2986_v19  ;;  %v643_v47 = vpop.f32.mrb[15].mxu1  ;;  %v1358_v19 = vmul.f32 %v3021_v45, %v3245_v1  ;;  %v1342_v1 = vmul.f32 %v3021_v45, %v3259_v44  ;;  %v687_v44 = vld [vmem:[%s3535_s6 + $0x18] sm:$0xff] }
 0x1fd   :  { %v680_v0 = vmin.f32 %v664_v37, 6.0  ;;  %v644_v36 = vadd.f32 %v643_v47, %v2988_v20  ;;  %2258 = vmatprep.subr.bf16.mxu0 %v2257_v11  ;;  %v685_v20 = vld [vmem:[%s3535_s6 + $0x8] sm:$0xff]  ;;  %v1578_v38 = vadd.f32 %v3295_v54, %v1344_v2  ;;  %v1362_v46 = vmul.f32 %v3021_v45, %v3299_v26  ;;  %v690_v26 = vld [vmem:[%s3535_s6 + $0x30] sm:$0xff]  ;;  %v3611_v37 = vld [vmem:[#allocation23_spill] sm:$0xff] }
 0x1fe   :  { %v667_v40 = vmax.f32 %v649_v34, 0.0  ;;  %2260 = vmatpush3.bf16.msra.mxu0 %v2257_v11  ;;  %v1592_v55 = vadd.f32 %v3269_v14, %v1358_v19  ;;  %v1576_v53 = vadd.f32 %v3273_v52, %v1342_v1  ;;  %v1345_v14 = vmul.f32 %v3021_v45, %v3283_v10  ;;  %v3601_v54 = vld [vmem:[#allocation36_spill] sm:$0xff]  ;;  %v3610_v11 = vld [vmem:[#allocation22_spill] sm:$0xff] }
 0x1ff   :  { %v2261_v15 = vpack.c.bf16 %v681_v12, %v680_v0  ;;  %v666_v57 = vmax.f32 %v644_v36, 0.0  ;;  %v3599_v10 = vpack.c.bf16 %v3135_v28, %v3132_v61  ;;  %v3600_v35 = vpack.c.bf16 %v3162_v39, %v3167_v13  ;;  %v3602_v28 = vld [vmem:[#allocation38_spill] sm:$0xff]  ;;  %v3604_v39 = vld [vmem:[#allocation16_spill] sm:$0xff]  ;;  %v3605_v13 = vld [vmem:[#allocation17_spill] sm:$0xff] }
 0x200   :  { %v683_v49 = vmin.f32 %v667_v40, 6.0  ;;  %2393 = vtanh.f32 %v1592_v55  ;;  %v1579_v52 = vadd.f32 %v3293_v32, %v1345_v14  ;;  %v1597_v32 = vadd.f32 %v3315_v6, %v1363_v31  ;;  %v693_v12 = vld [vmem:[%s3535_s6 + $0x48] sm:$0xff]  ;;  %v3613_v47 = vld [vmem:[#allocation26_spill] sm:$0xff]  ;;  %v3614_v0 = vld [vmem:[#allocation27_spill] sm:$0xff] }
 0x201   :  { %v682_v16 = vmin.f32 %v666_v57, 6.0  ;;  %2262 = vmatprep.subr.bf16.mxu0 %v2261_v15  ;;  %2395 = vtanh.f32 %v1577_v25  ;;  %v1347_v61 = vmul.f32 %v3021_v45, %v3601_v54  ;;  %v1596_v56 = vadd.f32 %v3602_v28, %v1362_v46  ;;  %v694_v40 = vld [vmem:[%s3535_s6 + $0x50] sm:$0xff] }
 0x202   :  { %2264 = vmatpush3.bf16.msra.mxu0 %v2261_v15  ;;  %2397 = vtanh.f32 %v1576_v53  ;;  %v1346_v6 = vmul.f32 %v3021_v45, %v3603_v62  ;;  %v3606_v59 = vpack.c.bf16 %v3604_v39, %v3605_v13  ;;  %v3609_v29 = vpack.c.bf16 %v3607_v58, %v3608_v60  ;;  %v692_v45 = vld [vmem:[%s3535_s6 + $0x40] sm:$0xff]  ;;  %v698_v53 = vld [vmem:[%s3535_s6 + $0x70] sm:$0xff] }
 0x203   :  { %v2265_v51 = vpack.c.bf16 %v683_v49, %v682_v16  ;;  %2399 = vtanh.f32 %v1595_v30  ;;  %v1581_v7 = vadd.f32 %v1449_v33, %v1347_v61  ;;  %v3612_v63 = vpack.c.bf16 %v3610_v11, %v3611_v37  ;;  %v3621_v61 = vld [vmem:[#allocation10_spill] sm:$0xff]  ;;  %v3622_v62 = vld [vmem:[#allocation11_spill] sm:$0xff] }
 0x204   :  { %2401 = vtanh.f32 %v1594_v48  ;;  %v1580_v8 = vadd.f32 %v1444_v23, %v1346_v6  ;;  %v2392_v22 = vpop.eup %2391  ;;  %v3615_v36 = vpack.c.bf16 %v3613_v47, %v3614_v0  ;;  %v2475_v48 = vmov 0.0|0.0  }
 0x205   :  { %2266 = vmatprep.subr.bf16.mxu0 %v2265_v51  ;;  %2403 = vtanh.f32 %v1579_v52  ;;  %2269 = vmatprep.subr.bf16.mxu1 %v2475_v48  ;;  %v2477_v52 = vmov 0.0  }
 0x206   :  { %2268 = vmatpush3.bf16.msra.mxu0 %v2265_v51  ;;  %2405 = vtanh.f32 %v1578_v38  ;;  %v3616_v51 = vld [vmem:[#allocation28_spill] sm:$0xff]  ;;  %2181 = vmatprep.mubr.msk.f32.mxu1 %vm2476_vm1, %v2477_v52 }
 0x207   :  { %2294 = vmatprep.subr.bf16.mxu0 %v3596_v4  ;;  %2407 = vtanh.f32 %v1597_v32  ;;  %v3618_v19 = vpack.c.bf16 %v3616_v51, %v3617_v3  ;;  %v3619_v38 = vld [vmem:[#allocation8_spill] sm:$0xff] }
 0x208   :  { %2409 = vtanh.f32 %v1596_v56 }
 0x209   :  { %2126 = vmatmul.mubr.f32.vlgmr.msra.gmra.mrb[16].mxu0 %v685_v20  ;;  %2411 = vtanh.f32 %v1581_v7  ;;  %v695_v20 = vld [vmem:[%s3535_s6 + $0x58] sm:$0xff] }
 0x20a   :  { %2296 = vmatpush3.bf16.msra.mxu0 %v3597_v24  ;;  %2128 = vmatprep.mubr.f32.mxu0 %v686_v5  ;;  %v2394_v21 = vpop.eup %2393  ;;  %2413 = vtanh.f32 %v1580_v8  ;;  %v3623_v8 = vld [vmem:[#allocation13_spill] sm:$0xff] }
 0x20b   :  { %2298 = vmatprep.subr.bf16.mxu0 %v3598_v18  ;;  %v2396_v34 = vpop.eup %2395  ;;  %v2313_v49 = vpack.c.bf16 %v2392_v22, %v2394_v21  ;;  %v699_v18 = vld [vmem:[%s3535_s6 + $0x78] sm:$0xff] }
 0x20c   :  { %v2398_v15 = vpop.eup %2397 }
 0x20d   :  { %2129 = vmatmul.mubr.f32.gmra.mrb[18].mxu0 %v687_v44  ;;  %v2400_v57 = vpop.eup %2399  ;;  %v2315_v5 = vpack.c.bf16 %v2396_v34, %v2398_v15  ;;  %v3625_v34 = vld [vmem:[#allocation14_spill] sm:$0xff] }
 0x20e   :  { %2300 = vmatpush3.bf16.msra.mxu0 %v3599_v10  ;;  %2131 = vmatprep.mubr.f32.mxu0 %v688_v41  ;;  %v2402_v16 = vpop.eup %2401  ;;  %v1654_v41 = vcombine.high %v1644_v9, %v1644_v9 }
 0x20f   :  { %2302 = vmatprep.subr.bf16.mxu0 %v3600_v35  ;;  %v2404_v27 = vpop.eup %2403  ;;  %v2317_v55 = vpack.c.bf16 %v2400_v57, %v2402_v16 }
 0x210   :  { %v2406_v4 = vpop.eup %2405 }
 0x211   :  { %2132 = vmatmul.mubr.f32.gmra.mrb[20].mxu0 %v689_v17  ;;  %v2408_v1 = vpop.eup %2407  ;;  %v2319_v44 = vpack.c.bf16 %v2404_v27, %v2406_v4  ;;  %v3620_v17 = vld [vmem:[#allocation9_spill] sm:$0xff]  ;;  %v3628_v4 = vld [vmem:[#allocation19_spill] sm:$0xff] }
 0x212   :  { %2304 = vmatpush3.bf16.msra.mxu0 %v3606_v59  ;;  %2134 = vmatprep.mubr.f32.mxu0 %v690_v26  ;;  %v2410_v25 = vpop.eup %2409 }
 0x213   :  { %2306 = vmatprep.subr.bf16.mxu0 %v3609_v29  ;;  %v2412_v24 = vpop.eup %2411  ;;  %v2321_v30 = vpack.c.bf16 %v2408_v1, %v2410_v25 }
 0x214   :  { %v2414_v14 = vpop.eup %2413 }
 0x215   :  { %2135 = vmatmul.mubr.f32.gmra.mrb[22].mxu0 %v691_v50  ;;  %v2323_v2 = vpack.c.bf16 %v2412_v24, %v2414_v14 }
 0x216   :  { %2308 = vmatpush3.bf16.msra.mxu0 %v3612_v63  ;;  %2137 = vmatprep.mubr.f32.mxu0 %v692_v45  ;;  %v3624_v45 = vld [vmem:[#allocation12_spill] sm:$0xff] }
 0x217   :  { %2310 = vmatprep.subr.bf16.mxu0 %v3615_v36 }
 0x219   :  { %2138 = vmatmul.mubr.f32.gmra.mrb[24].mxu0 %v693_v12 }
 0x21a   :  { %2312 = vmatpush3.bf16.msra.mxu0 %v3618_v19  ;;  %2140 = vmatprep.mubr.f32.mxu0 %v694_v40  ;;  %v3626_v40 = vld [vmem:[#allocation15_spill] sm:$0xff]  ;;  %v3627_v19 = vld [vmem:[#allocation18_spill] sm:$0xff] }
 0x21b   :  { %2314 = vmatprep.subr.bf16.mxu0 %v2313_v49 }
 0x21d   :  { %2141 = vmatmul.mubr.f32.gmra.mrb[26].mxu0 %v695_v20 }
 0x21e   :  { %2316 = vmatpush3.bf16.msra.mxu0 %v2315_v5  ;;  %2143 = vmatprep.mubr.f32.mxu0 %v696_v42 }
 0x21f   :  { %2318 = vmatprep.subr.bf16.mxu0 %v2317_v55  ;;  %v1314_v55 = vpop.permute.xlu0 %1313 }
 0x221   :  { %2144 = vmatmul.mubr.f32.gmra.mrb[28].mxu0 %v697_v43 }
 0x222   :  { %2320 = vmatpush3.bf16.msra.mxu0 %v2319_v44  ;;  %2146 = vmatprep.mubr.f32.mxu0 %v698_v53  ;;  %v3629_v44 = vld [vmem:[#allocation24_spill] sm:$0xff] }
 0x223   :  { %2322 = vmatprep.subr.bf16.mxu0 %v2321_v30 }
 0x225   :  { %2147 = vmatmul.mubr.f32.gmra.mrb[30].mxu0 %v699_v18 }
 0x226   :  { %2324 = vmatpush3.bf16.msra.mxu0 %v2323_v2  ;;  %1723 = vmatprep.mubr.f32.mxu0 %v1654_v41  ;;  %v3630_v41 = vld [vmem:[#allocation25_spill] sm:$0xff] }
 0x229   :  { %1724 = vmatmul.mubr.f32.vlgmr.msra.gmra.mrb[32].mxu0 %v1644_v9  ;;  %v1319_v9 = vpop.permute.xlu1 %1318 }
 0x2dc   :  { %v2127_v31 = vpop.f32.mrb[16].mxu0 }
 0x2dd   :  { %v868_v46 = vadd.f32 %v2127_v31, %v3619_v38  ;;  %v862_v10 = vpop.f32.mrb[17].mxu0 }
 0x2de   :  { %v863_v32 = vadd.f32 %v862_v10, %v3620_v17 }
 0x2df   :  { %v942_v33 = vmax.f32 %v868_v46, 0.0 }
 0x2e0   :  { %v941_v35 = vmax.f32 %v863_v32, 0.0  ;;  %v2130_v26 = vpop.f32.mrb[18].mxu0  ;;  %v3631_v32 = vld [vmem:[#allocation30_spill] sm:$0xff] }
 0x2e1   :  { %v958_v54 = vmin.f32 %v942_v33, 6.0  ;;  %v878_v28 = vadd.f32 %v2130_v26, %v3621_v61  ;;  %v872_v56 = vpop.f32.mrb[19].mxu0  ;;  %v1554_v26 = vpop.permute.xlu0 %1553  ;;  %v3632_v61 = vld [vmem:[#allocation31_spill] sm:$0xff] }
 0x2e2   :  { %v957_v23 = vmin.f32 %v941_v35, 6.0  ;;  %v873_v6 = vadd.f32 %v872_v56, %v3622_v62  ;;  %v1559_v56 = vpop.permute.xlu1 %1558  ;;  %v2425_v62 = vld [vmem:[%s3530_s1] ss:$0 sm:$0xff] }
 0x2e3   :  { %v944_v7 = vmax.f32 %v878_v28, 0.0 }
 0x2e4   :  { %v2270_v39 = vpack.c.bf16 %v958_v54, %v957_v23  ;;  %v943_v13 = vmax.f32 %v873_v6, 0.0  ;;  %v2133_v59 = vpop.f32.mrb[20].mxu0  ;;  %v1369_v6 = vmul.f32 %v2425_v62, %v1319_v9 }
 0x2e5   :  { %v960_v50 = vmin.f32 %v944_v7, 6.0  ;;  %v888_v58 = vadd.f32 %v2133_v59, %v3623_v8  ;;  %v882_v60 = vpop.f32.mrb[21].mxu0  ;;  %v1368_v59 = vmul.f32 %v2425_v62, %v1314_v55  ;;  %v3633_v8 = vld [vmem:[#allocation34_spill] sm:$0xff] }
 0x2e6   :  { %v959_v29 = vmin.f32 %v943_v13, 6.0  ;;  %v883_v22 = vadd.f32 %v882_v60, %v3624_v45  ;;  %2271 = vmatpush3.bf16.msra.mxu1 %v2270_v39 }
 0x2e7   :  { %v946_v21 = vmax.f32 %v888_v58, 0.0  ;;  %2272 = vmatprep.subr.bf16.mxu1 %v2475_v48 }
 0x2e8   :  { %v2273_v11 = vpack.c.bf16 %v960_v50, %v959_v29  ;;  %v945_v37 = vmax.f32 %v883_v22, 0.0  ;;  %v2136_v63 = vpop.f32.mrb[22].mxu0  ;;  %v1603_v29 = vadd.f32 %v1559_v56, %v1369_v6  ;;  %v3634_v22 = vld [vmem:[#allocation35_spill] sm:$0xff] }
 0x2e9   :  { %v962_v12 = vmin.f32 %v946_v21, 6.0  ;;  %v898_v47 = vadd.f32 %v2136_v63, %v3625_v34  ;;  %v892_v0 = vpop.f32.mrb[23].mxu0  ;;  %v1324_v63 = vpop.permute.xlu0 %1323 }
 0x2ea   :  { %v961_v36 = vmin.f32 %v945_v37, 6.0  ;;  %v893_v15 = vadd.f32 %v892_v0, %v3626_v40  ;;  %2274 = vmatpush3.bf16.msra.mxu1 %v2273_v11  ;;  %v1602_v11 = vadd.f32 %v1554_v26, %v1368_v59  ;;  %2415 = vtanh.f32 %v1603_v29 }
 0x2eb   :  { %v948_v57 = vmax.f32 %v898_v47, 0.0  ;;  %2275 = vmatprep.subr.bf16.mxu1 %v2475_v48 }
 0x2ec   :  { %v2276_v49 = vpack.c.bf16 %v962_v12, %v961_v36  ;;  %v947_v16 = vmax.f32 %v893_v15, 0.0  ;;  %v2139_v51 = vpop.f32.mrb[24].mxu0  ;;  %2417 = vtanh.f32 %v1602_v11 }
 0x2ed   :  { %v964_v3 = vmin.f32 %v948_v57, 6.0  ;;  %v908_v20 = vadd.f32 %v2139_v51, %v3627_v19  ;;  %v902_v27 = vpop.f32.mrb[25].mxu0  ;;  %v1370_v57 = vmul.f32 %v2425_v62, %v1324_v63  ;;  %v973_v51 = vld [vmem:[%s3537_s8] sm:$0x7]  ;;  %v3635_v19 = vld [vmem:[#allocation32_spill] sm:$0xff] }
 0x2ee   :  { %v963_v42 = vmin.f32 %v947_v16, 6.0  ;;  %v903_v5 = vadd.f32 %v902_v27, %v3628_v4  ;;  %2277 = vmatpush3.bf16.msra.mxu1 %v2276_v49  ;;  %v1564_v16 = vpop.permute.xlu1 %1563 }
 0x2ef   :  { %v950_v1 = vmax.f32 %v908_v20, 0.0  ;;  %2278 = vmatprep.subr.bf16.mxu1 %v2475_v48  ;;  %v3636_v20 = vld [vmem:[#allocation33_spill] sm:$0xff] }
 0x2f0   :  { %v2279_v25 = vpack.c.bf16 %v964_v3, %v963_v42  ;;  %v949_v43 = vmax.f32 %v903_v5, 0.0  ;;  %v2142_v53 = vpop.f32.mrb[26].mxu0  ;;  %v1604_v3 = vadd.f32 %v1564_v16, %v1370_v57  ;;  %v3637_v27 = vpack.c.bf16 %v3635_v19, %v3636_v20  ;;  %v3638_v5 = vld [vmem:[#allocation39_spill] sm:$0xff] }
 0x2f1   :  { %v966_v24 = vmin.f32 %v950_v1, 6.0  ;;  %v918_v14 = vadd.f32 %v2142_v53, %v3629_v44  ;;  %v912_v30 = vpop.f32.mrb[27].mxu0  ;;  %v3639_v1 = vld [vmem:[#allocation40_spill] sm:$0xff] }
 0x2f2   :  { %v965_v18 = vmin.f32 %v949_v43, 6.0  ;;  %v913_v2 = vadd.f32 %v912_v30, %v3630_v41  ;;  %2280 = vmatpush3.bf16.msra.mxu1 %v2279_v25  ;;  %2419 = vtanh.f32 %v1604_v3  ;;  %v3640_v55 = vpack.c.bf16 %v3638_v5, %v3639_v1  ;;  %v1645_v43 = vld [vmem:[%s3541_s12 + $0x8] sm:$0x7]  ;;  %v978_v9 = vpop.permute.xlu1 %977 }
 0x2f3   :  { %v952_v31 = vmax.f32 %v918_v14, 0.0  ;;  %2281 = vmatprep.subr.bf16.mxu1 %v2475_v48 }
 0x2f4   :  { %v2282_v38 = vpack.c.bf16 %v966_v24, %v965_v18  ;;  %v951_v46 = vmax.f32 %v913_v2, 0.0  ;;  %v2145_v10 = vpop.f32.mrb[28].mxu0  ;;  %v2416_v42 = vpop.eup %2415 }
 0x2f5   :  { %v968_v17 = vmin.f32 %v952_v31, 6.0  ;;  %v928_v33 = vadd.f32 %v2145_v10, %v3631_v32  ;;  %v922_v35 = vpop.f32.mrb[29].mxu0 }
 0x2f6   :  { %v967_v54 = vmin.f32 %v951_v46, 6.0  ;;  %v923_v28 = vadd.f32 %v922_v35, %v3632_v61  ;;  %2283 = vmatpush3.bf16.msra.mxu1 %v2282_v38  ;;  %v2418_v4 = vpop.eup %2417 }
 0x2f7   :  { %v954_v23 = vmax.f32 %v928_v33, 0.0  ;;  %2284 = vmatprep.subr.bf16.mxu1 %v2475_v48  ;;  %v2332_v25 = vpack.c.bf16 %v2416_v42, %v2418_v4 }
 0x2f8   :  { %v2285_v7 = vpack.c.bf16 %v968_v17, %v967_v54  ;;  %v953_v39 = vmax.f32 %v923_v28, 0.0  ;;  %v2148_v13 = vpop.f32.mrb[30].mxu0 }
 0x2f9   :  { %v970_v50 = vmin.f32 %v954_v23, 6.0  ;;  %v938_v58 = vadd.f32 %v2148_v13, %v3633_v8  ;;  %v932_v60 = vpop.f32.mrb[31].mxu0 }
 0x2fa   :  { %v969_v45 = vmin.f32 %v953_v39, 6.0  ;;  %v933_v21 = vadd.f32 %v932_v60, %v3634_v22  ;;  %2286 = vmatpush3.bf16.msra.mxu1 %v2285_v7 }
 0x2fb   :  { %v956_v37 = vmax.f32 %v938_v58, 0.0  ;;  %2287 = vmatprep.subr.bf16.mxu1 %v2475_v48 }
 0x2fc   :  { %v2288_v12 = vpack.c.bf16 %v970_v50, %v969_v45  ;;  %v955_v34 = vmax.f32 %v933_v21, 0.0  ;;  %v1998_v47 = vpop.f32.mrb[32].mxu0  ;;  %v2420_v53 = vpop.eup %2419 }
 0x2fd   :  { %v972_v0 = vmin.f32 %v956_v37, 6.0  ;;  %v1999_v36 = vpop.f32.mrb[33].mxu0 }
 0x2fe   :  { %v971_v40 = vmin.f32 %v955_v34, 6.0  ;;  %v2000_v15 = vadd.f32 %v1999_v36, %v1998_v47  ;;  %2289 = vmatpush3.bf16.msra.mxu1 %v2288_v12 }
 0x2ff   :  { %2290 = vmatprep.subr.bf16.mxu1 %v2475_v48 }
 0x300   :  { %v2291_v49 = vpack.c.bf16 %v972_v0, %v971_v40 }
 0x302   :  { %2292 = vmatpush3.bf16.msra.mxu1 %v2291_v49 }
 0x303   :  { %2325 = vmatprep.subr.bf16.mxu1 %v2475_v48 }
 0x305   :  { %2182 = vmatmul.mubr.f32.vlgmr.msra.gmra.mrb[16].mxu1 %v973_v51 }
 0x306   :  { %2327 = vmatpush3.bf16.msra.mxu1 %v3637_v27  ;;  %2198 = vmatprep.mubr.msk.f32.mxu1 %vm2476_vm1, %v2477_v52 }
 0x307   :  { %2328 = vmatprep.subr.bf16.mxu1 %v2475_v48 }
 0x30a   :  { %2330 = vmatpush3.bf16.msra.mxu1 %v3640_v55 }
 0x30b   :  { %2331 = vmatprep.subr.bf16.mxu1 %v2475_v48 }
 0x30e   :  { %2333 = vmatpush3.bf16.msra.mxu1 %v2332_v25 }
 0x30f   :  { %2196 = vmatprep.subr.mxu1 %v2477_v52 }
 0x312   :  { %2197 = vmatpush3.msra.mxu1 %v2420_v53 }
 0x313   :  { %2199 = vmatmul.mubr.msk.f32.vlgmr.msra.gmra.mrb[18].mxu1 %vm1656_vm2, %v1645_v43 }
 0x3d8   :  { %v1046_v24 = vpop.f32.mrb[16].mxu1 }
 0x3d9   :  { %v1047_v44 = vadd.f32 %v1046_v24, %v978_v9  ;;  %v2183_v14 = vpop.f32.mrb[17].mxu1 }
 0x3db   :  { %v1050_v30 = vmax.f32 %v1047_v44, 0.0 }
 0x3dd   :  { %v1051_v48 = vmin.f32 %v1050_v30, 6.0 }
 0x3df   :  { %1052 = vst [vmem:[#allocation2] sm:$0x7] %v1051_v48 }
 0x3e0   :  { %2437 = shalt.err (!%p2434_p4)
}
 0x3e1   :  { %s2438_s22 = scalar_lea.hbm %s3544_s15, 64 }
 0x3e2   :  { %p2439_p5 = scmp.ne.s32.totalorder %s3544_s15, %s2438_s22  ;;  %p2442_p6 = scmp.lt.u32.totalorder %s2438_s22, %s3544_s15 }
 0x3e4   :  { %p2444_p7 = pnand %p2442_p6, %p2439_p5 }
 0x3e6   :  { %2447 = shalt.err (!%p2444_p7)
}
 0x3e7   :  { %1830 = dma.vmem_to_hbm [thread:$0]  %s1828_s10, 64, %s3544_s15, [#allocation3]   ;;  %v1650_v52 = vpop.permute.xlu0 %1649  ;;  %v1795_v41 = vpop.f32.mrb[18].mxu1 }
 0x3e8   :  { %v1726_v18 = vadd.f32 %v2000_v15, %v1650_v52  ;;  %v2200_v31 = vpop.f32.mrb[19].mxu1  ;;  %s2479_s14 = smov [#allocation4]  }
 0x3e9   :  { %s1837_s15 = sshll.u32 %s2479_s14, 4  ;;  %s1838_s15 = int_to_ptr.vmem [resolvable:$true] %s1837_s15 }
 0x3ea   :  { %v1796_v2 = vadd.f32 %v1795_v41, %v1726_v18  ;;  %s2448_s26 = scalar_lea.vmem %s1838_s15, 64  ;;  %p2453_p9 = scmp.lt.s32.totalorder %s1838_s15, %s1838_s15 }
 0x3eb   :  { %v1817_v56 = vpop.permute.xlu0 %1816  ;;  %p2449_p8 = scmp.ne.s32.totalorder %s1838_s15, %s2448_s26  ;;  %p2454_p10 = scmp.lt.s32.totalorder %s2448_s26, %s2448_s26 }
 0x3ec   :  { %v1800_v38 = vmin.f32 %v1796_v2, 20.0  ;;  %vm1799_vm4 = vcmp.gt.f32.partialorder %v1796_v2, 20.0 }
 0x3ed   :  { %p2455_p11 = por %p2454_p10, %p2453_p9 }
 0x3ee   :  { %v1801_v46 = vmul.f32 1.442695, %v1800_v38 }
 0x3ef   :  { %p2456_p12 = pnand %p2455_p11, %p2449_p8 }
 0x3f0   :  { %2421 = vpow2.f32 %v1801_v46 }
 0x3fa   :  { %v2422_v10 = vpop.eup %2421 }
 0x3fb   :  { %v1803_v17 = vadd.f32 1.0, %v2422_v10  ;;  %v1806_v32 = vmul.f32 -0.5, %v2422_v10  ;;  %v1809_v35 = vand.u32 2147483647, %v2422_v10 }
 0x3fd   :  { %2423 = vlog2.f32 %v1803_v17  ;;  %v1807_v33 = vadd.f32 1.0, %v1806_v32  ;;  %vm1810_vm3 = vcmp.lt.f32.partialorder %v1809_v35, 0.0004427343 }
 0x3ff   :  { %v1808_v61 = vmul.f32 %v2422_v10, %v1807_v33 }
 0x407   :  { %v2424_v26 = vpop.eup %2423 }
 0x408   :  { %v1805_v54 = vmul.f32 0.6931472, %v2424_v26 }
 0x40a   :  { %v1811_v28 = vsel %vm1810_vm3, %v1808_v61, %v1805_v54 }
 0x40b   :  { %v1812_v23 = vsel %vm1799_vm4, %v1796_v2, %v1811_v28 }
 0x40c   :  { %v1819_v62 = vsub.f32 %v1812_v23, %v1817_v56 }
 0x40e   :  { %1820 = vst [vmem:[#allocation4] sm:$0x7] %v1819_v62 }
 0x40f   :  { %2459 = shalt.err (!%p2456_p12)
}
 0x410   :  { %s2460_s28 = scalar_lea.hbm %s3545_s16, 64 }
 0x411   :  { %p2461_p13 = scmp.ne.s32.totalorder %s3545_s16, %s2460_s28  ;;  %p2464_p0 = scmp.lt.u32.totalorder %s2460_s28, %s3545_s16 }
 0x413   :  { %p2466_p1 = pnand %p2464_p0, %p2461_p13 }
 0x415   :  { %2469 = shalt.err (!%p2466_p1)
}
 0x416   :  { %1840 = dma.vmem_to_hbm [thread:$0]  %s1838_s15, 64, %s3545_s16, [#allocation5]  }
 0x417   :  { %2470 = dma.done.wait [#allocation3], 64  }
 0x418   :  { %2471 = vsyncadd [#allocation3], 4294967232 }
 0x419   :  { %2472 = dma.done.wait [#allocation5], 64  }
 0x41a   :  { %2473 = vsyncadd [#allocation5], 4294967232 }
 0x41b   :  { %1847 = vsyncpa [#allocation3], 1 }
 0x41c   :  { %1848 = vsyncpa [#allocation5], 1 }

</bundles_post_ra>
